<compile_context>
chip_gen: v5e
topology: v5e:2x2
jax: 0.10.0
libtpu: 0.0.40
codegen_flags: <defaults>
</compile_context>

<pallas_src>
import jax
import jax.numpy as jnp
from jax import lax
from jax.experimental import pallas as pl
from jax.experimental.pallas import tpu as pltpu


_COORD_SENTINEL = 1.0e8   # padded points sit far away from any realistic data
_BIG_IDX = 2 ** 30        # index sentinel for the argmin finalize
_BIG_DIST = 3.0e38        # finite "infinity" for the running-min init


def _round_up(x, m):
    return (x + m - 1) // m * m


def _rowmin_argmin(scr_ref, rows, cols):
    """Fused single-pass (min, argmin) over axis 0 of a (rows, cols) VMEM tile.

    Streams the tile exactly once: running (value, strip-id) select-min over
    8-sublane strips (loads + cmp + 2 selects per strip, intermediates stay in
    vregs), then a tiny (8, cols) cross-sublane finalize.  Returns
    (vals (1, cols) f32, row_idx (1, cols) i32); first occurrence on ties.
    """
    strip_iota = lax.broadcasted_iota(jnp.int32, (8, cols), 0)   # hoisted
    bv0 = jnp.full((8, cols), _BIG_DIST, dtype=jnp.float32)
    bi0 = jnp.zeros((8, cols), dtype=jnp.int32)

    def body(s, carry):
        bv, bi = carry
        off = pl.multiple_of(s * 8, 8)
        v = scr_ref[pl.ds(off, 8), :]          # (8, cols) strip, read once
        better = v < bv                        # strict <: earliest strip wins
        bv = jnp.where(better, v, bv)
        bi = jnp.where(better, s, bi)          # track strip id (scalar splat)
        return bv, bi

    bv, bi = lax.fori_loop(0, rows // 8, body, (bv0, bi0))

    # Finalize across the 8 sublane positions (cols/128 vregs — tiny).
    row_idx = bi * 8 + strip_iota
    vmin = jnp.min(bv, axis=0, keepdims=True)
    imin = jnp.min(jnp.where(bv == vmin, row_idx, _BIG_IDX),
                   axis=0, keepdims=True)
    return vmin, imin


def _make_chamfer_kernel(TN, TM):
    def kernel(a1q_ref, a1k_ref, a2k_ref, a2q_ref,
               dist1_ref, idx1_ref, dist2_ref, idx2_ref,
               d_scr, dt_scr):
        # a1q/a1k : (1, 8, TN)  xyz1 tile in "query"/"key" augmented form
        # a2k/a2q : (1, 8, Mp)  xyz2 cloud (resident per batch), both forms
        # dist1/idx1 : (1, 1, TN)  lane-dense accumulators, resident over m
        # dist2/idx2 : (1, 1, Mp)  lane-dense accumulators, resident per batch
        # d_scr  : (TN, TM) VMEM scratch  (dist(x1_i, x2_j))
        # dt_scr : (TM, TN) VMEM scratch  (same distances, transposed)
        i = pl.program_id(1)          # xyz1 tile index (reduction axis: dist2)
        m = pl.program_id(2)          # xyz2 tile index (reduction axis: dist1)
        m_base = m * TM
        m_off = pl.multiple_of(m_base, TM)

        a1q = a1q_ref[0]                                # (8, TN)
        a1k = a1k_ref[0]                                # (8, TN)
        a2k = a2k_ref[0, :, pl.ds(m_off, TM)]           # (8, TM)
        a2q = a2q_ref[0, :, pl.ds(m_off, TM)]           # (8, TM)

        # query(p) . key(q) == |p|^2 + |q|^2 - 2 p.q == squared distance.
        dn = (((0,), (0,)), ((), ()))
        d_scr[...] = lax.dot_general(
            a1q, a2k, dimension_numbers=dn,
            preferred_element_type=jnp.float32,
            precision=lax.Precision.HIGHEST)            # (TN, TM)
        dt_scr[...] = lax.dot_general(
            a2q, a1k, dimension_numbers=dn,
            preferred_element_type=jnp.float32,
            precision=lax.Precision.HIGHEST)            # (TM, TN)

        # Fused single-pass min/argmin over sublanes for both directions.
        d2_loc, r2_loc = _rowmin_argmin(d_scr, TN, TM)   # (1, TM): rows = xyz1
        d1_loc, r1_loc = _rowmin_argmin(dt_scr, TM, TN)  # (1, TN): rows = xyz2

        d1_loc = jnp.maximum(d1_loc, 0.0)                # clamp reduced vectors
        d2_loc = jnp.maximum(d2_loc, 0.0)
        i1_loc = r1_loc + m_base                         # global xyz2 index
        i2_loc = r2_loc + i * TN                         # global xyz1 index

        # ---- dist1 / idx1: lane-dense, resident across the m sweep.
        @pl.when(m == 0)
        def _():
            dist1_ref[...] = d1_loc[None]
            idx1_ref[...] = i1_loc[None]

        @pl.when(m > 0)
        def _():
            prev = dist1_ref[...]
            new = d1_loc[None]
            better = new < prev           # strict <  keeps first occurrence
            dist1_ref[...] = jnp.where(better, new, prev)
            idx1_ref[...] = jnp.where(better, i1_loc[None], idx1_ref[...])

        # ---- dist2 / idx2: lane-dense TM slice of the per-batch accumulator.
        @pl.when(i == 0)
        def _():
            dist2_ref[:, :, pl.ds(m_off, TM)] = d2_loc[None]
            idx2_ref[:, :, pl.ds(m_off, TM)] = i2_loc[None]

        @pl.when(i > 0)
        def _():
            prev = dist2_ref[:, :, pl.ds(m_off, TM)]
            new = d2_loc[None]
            better = new < prev
            dist2_ref[:, :, pl.ds(m_off, TM)] = jnp.where(better, new, prev)
            idx2_ref[:, :, pl.ds(m_off, TM)] = jnp.where(
                better, i2_loc[None], idx2_ref[:, :, pl.ds(m_off, TM)])

    return kernel


def chamfer_distance(xyz1, xyz2, *, tile_n=None, tile_m=None):
    """Pallas TPU Chamfer distance forward.

    xyz1: (B, N, 3), xyz2: (B, M, 3)
    returns (dist1 (B,N) f32, dist2 (B,M) f32, idx1 (B,N) i32, idx2 (B,M) i32)
    """
    B, N, _ = xyz1.shape
    _, M, _ = xyz2.shape
    xyz1 = xyz1.astype(jnp.float32)
    xyz2 = xyz2.astype(jnp.float32)

    # Shared per-batch centering: squared distances are translation invariant;
    # centering tames cancellation in the dot-product distance formulation.
    center = (jnp.sum(xyz1, axis=1) + jnp.sum(xyz2, axis=1)) / float(N + M)
    xyz1c = xyz1 - center[:, None, :]
    xyz2c = xyz2 - center[:, None, :]

    # Tile sizes: large MXU-friendly tiles; pad Np/Mp up to the tile so
    # non-divisible sizes never force a 128-wide fallback.
    TN = min(512, _round_up(N, 128)) if tile_n is None else _round_up(tile_n, 128)
    TM = min(1024, _round_up(M, 128)) if tile_m is None else _round_up(tile_m, 128)
    Np = _round_up(N, TN)
    Mp = _round_up(M, TM)

    def pad_points(x, target):
        pad = target - x.shape[1]
        if pad:
            filler = jnp.full((x.shape[0], pad, 3), _COORD_SENTINEL, x.dtype)
            x = jnp.concatenate([x, filler], axis=1)
        return x

    p1 = pad_points(xyz1c, Np)    # (B, Np, 3)
    p2 = pad_points(xyz2c, Mp)    # (B, Mp, 3)

    # Augmented, coord-major, lane-dense layouts (squared norms hoisted here).
    def query_form(p):            # rows: [-2x, -2y, -2z, |p|^2, 1, 0, 0, 0]
        sq = jnp.sum(p * p, axis=2)
        z = jnp.zeros_like(sq)
        return jnp.stack([-2.0 * p[..., 0], -2.0 * p[..., 1], -2.0 * p[..., 2],
                          sq, jnp.ones_like(sq), z, z, z], axis=1)

    def key_form(p):              # rows: [x, y, z, 1, |p|^2, 0, 0, 0]
        sq = jnp.sum(p * p, axis=2)
        z = jnp.zeros_like(sq)
        return jnp.stack([p[..., 0], p[..., 1], p[..., 2],
                          jnp.ones_like(sq), sq, z, z, z], axis=1)

    a1q = query_form(p1)          # (B, 8, Np)  lhs of d
    a1k = key_form(p1)            # (B, 8, Np)  rhs of dT
    a2k = key_form(p2)            # (B, 8, Mp)  rhs of d   (resident per batch)
    a2q = query_form(p2)          # (B, 8, Mp)  lhs of dT  (resident per batch)

    grid = (B, Np // TN, Mp // TM)

    grid_spec = pltpu.PrefetchScalarGridSpec(
        num_scalar_prefetch=0,
        grid=grid,
        in_specs=[
            # xyz1 tiles: constant along m -> fetched once per N-tile.
            pl.BlockSpec((1, 8, TN), lambda b, i, m: (b, 0, i)),
            pl.BlockSpec((1, 8, TN), lambda b, i, m: (b, 0, i)),
            # xyz2 cloud: constant along i and m -> fetched once per batch.
            pl.BlockSpec((1, 8, Mp), lambda b, i, m: (b, 0, 0)),
            pl.BlockSpec((1, 8, Mp), lambda b, i, m: (b, 0, 0)),
        ],
        out_specs=[
            pl.BlockSpec((1, 1, TN), lambda b, i, m: (b, 0, i)),   # dist1 acc
            pl.BlockSpec((1, 1, TN), lambda b, i, m: (b, 0, i)),   # idx1  acc
            pl.BlockSpec((1, 1, Mp), lambda b, i, m: (b, 0, 0)),   # dist2 acc
            pl.BlockSpec((1, 1, Mp), lambda b, i, m: (b, 0, 0)),   # idx2  acc
        ],
        scratch_shapes=[
            pltpu.VMEM((TN, TM), jnp.float32),   # d  tile
            pltpu.VMEM((TM, TN), jnp.float32),   # dT tile
        ],
    )

    out_shape = (
        jax.ShapeDtypeStruct((B, 1, Np), jnp.float32),
        jax.ShapeDtypeStruct((B, 1, Np), jnp.int32),
        jax.ShapeDtypeStruct((B, 1, Mp), jnp.float32),
        jax.ShapeDtypeStruct((B, 1, Mp), jnp.int32),
    )

    # Two K=8 matmuls + ~3 VPU ops/elem of reduce work per direction.
    flops = B * Np * Mp * (2 * 2 * 8 + 6)
    bytes_accessed = (4 * B * 2 * 8 * (Np + Mp * (Np // TN))
                      + 8 * B * (Np + Mp))

    dist1, idx1, dist2, idx2 = pl.pallas_call(
        _make_chamfer_kernel(TN, TM),
        out_shape=out_shape,
        grid_spec=grid_spec,
        compiler_params=pltpu.CompilerParams(
            dimension_semantics=("parallel", "arbitrary", "arbitrary"),
            vmem_limit_bytes=48 * 1024 * 1024),
        cost_estimate=pl.CostEstimate(
            flops=int(flops), transcendentals=0,
            bytes_accessed=int(bytes_accessed)),
    )(a1q, a1k, a2k, a2q)

    return (dist1[:, 0, :N], dist2[:, 0, :M],
            idx1[:, 0, :N], idx2[:, 0, :M])


def _reference(xyz1, xyz2):
    # Plain-JAX reference (direct (a-b)^2 formulation).
    d = jnp.sum((xyz1[:, :, None, :] - xyz2[:, None, :, :]) ** 2, axis=-1)
    dist1 = jnp.min(d, axis=2)
    idx1 = jnp.argmin(d, axis=2).astype(jnp.int32)
    dist2 = jnp.min(d, axis=1)
    idx2 = jnp.argmin(d, axis=1).astype(jnp.int32)
    return dist1, dist2, idx1, idx2


def _check(xyz1, xyz2, atol=1e-4, **tiles):
    dist1, dist2, idx1, idx2 = chamfer_distance(xyz1, xyz2, **tiles)
    jax.block_until_ready((dist1, dist2, idx1, idx2))
    rd1, rd2, ri1, ri2 = _reference(xyz1, xyz2)

    assert jnp.allclose(dist1, rd1, atol=atol, rtol=atol), "dist1 mismatch"
    assert jnp.allclose(dist2, rd2, atol=atol, rtol=atol), "dist2 mismatch"

    # Each returned index must point at a minimizing neighbour (exact index
    # equality with the reference can only differ on fp near-ties between the
    # dot-product and (a-b)^2 formulations).
    near1 = jnp.take_along_axis(xyz2, idx1[..., None], axis=1)   # (B, N, 3)
    near2 = jnp.take_along_axis(xyz1, idx2[..., None], axis=1)   # (B, M, 3)
    d1c = jnp.sum((xyz1 - near1) ** 2, axis=-1)
    d2c = jnp.sum((xyz2 - near2) ** 2, axis=-1)
    assert jnp.allclose(d1c, rd1, atol=atol, rtol=atol), "idx1 not a minimizer"
    assert jnp.allclose(d2c, rd2, atol=atol, rtol=atol), "idx2 not a minimizer"
    return dist1, dist2, idx1, idx2


if __name__ == "__main__":
    key = jax.random.PRNGKey(0)
    k1, k2, k3, k4 = jax.random.split(key, 4)

    # Small single-tile case — matches the original module's toy usage.
    B, N, M = 2, 128, 64
    xyz1 = jax.random.normal(k1, (B, N, 3), dtype=jnp.float32)
    xyz2 = jax.random.normal(k2, (B, M, 3), dtype=jnp.float32)
    _check(xyz1, xyz2)

    # Non-multiple-of-128 sizes.  Forcing 128-wide tiles exercises point
    # padding, multiple i/m tiles and both running-min accumulator paths;
    # the default call exercises the padded single-tile path.
    B2, N2, M2 = 2, 500, 300
    xyz1b = jax.random.normal(k3, (B2, N2, 3), dtype=jnp.float32)
    xyz2b = jax.random.normal(k4, (B2, M2, 3), dtype=jnp.float32)
    _check(xyz1b, xyz2b, tile_n=128, tile_m=128)
    _check(xyz1b, xyz2b)

    print("KERNEL_OK")
</pallas_src>

<mosaic_0001>
module attributes {stable_mosaic.version = 11 : i64} {
  func.func @kernel(%arg0: i32, %arg1: i32, %arg2: i32, %arg3: memref<1x8x128xf32, #tpu.memory_space<vmem>>, %arg4: memref<1x8x128xf32, #tpu.memory_space<vmem>>, %arg5: memref<1x8x128xf32, #tpu.memory_space<vmem>>, %arg6: memref<1x8x128xf32, #tpu.memory_space<vmem>>, %arg7: memref<1x1x128xf32, #tpu.memory_space<vmem>>, %arg8: memref<1x1x128xi32, #tpu.memory_space<vmem>>, %arg9: memref<1x1x128xf32, #tpu.memory_space<vmem>>, %arg10: memref<1x1x128xi32, #tpu.memory_space<vmem>>, %arg11: memref<128x128xf32, #tpu.memory_space<vmem>>, %arg12: memref<128x128xf32, #tpu.memory_space<vmem>>) attributes {dimension_semantics = [#tpu.dimension_semantics<parallel>, #tpu.dimension_semantics<arbitrary>, #tpu.dimension_semantics<arbitrary>], iteration_bounds = array<i64: 2, 1, 1>, scalar_prefetch = 0 : i64, scratch_operands = 2 : i64, tpu.core_type = #tpu.core_type<tc>, window_params = [{transform_indices = @transform_0, window_bounds = array<i64: 1, 8, 128>}, {transform_indices = @transform_1, window_bounds = array<i64: 1, 8, 128>}, {transform_indices = @transform_2, window_bounds = array<i64: 1, 8, 128>}, {transform_indices = @transform_3, window_bounds = array<i64: 1, 8, 128>}, {transform_indices = @transform_4, window_bounds = array<i64: 1, 1, 128>}, {transform_indices = @transform_5, window_bounds = array<i64: 1, 1, 128>}, {transform_indices = @transform_6, window_bounds = array<i64: 1, 1, 128>}, {transform_indices = @transform_7, window_bounds = array<i64: 1, 1, 128>}]} {
    %c128_i32 = arith.constant 128 : i32
    %0 = arith.muli %arg2, %c128_i32 : i32
    %1 = tpu.assume_multiple %0, 128 : i32
    %c0 = arith.constant 0 : index
    %c0_0 = arith.constant 0 : index
    %c0_1 = arith.constant 0 : index
    %2 = vector.load %arg3[%c0, %c0_0, %c0_1] : memref<1x8x128xf32, #tpu.memory_space<vmem>>, vector<1x8x128xf32>
    %3 = vector.shape_cast %2 : vector<1x8x128xf32> to vector<8x128xf32>
    %c0_2 = arith.constant 0 : index
    %c0_3 = arith.constant 0 : index
    %c0_4 = arith.constant 0 : index
    %4 = vector.load %arg4[%c0_2, %c0_3, %c0_4] : memref<1x8x128xf32, #tpu.memory_space<vmem>>, vector<1x8x128xf32>
    %5 = vector.shape_cast %4 : vector<1x8x128xf32> to vector<8x128xf32>
    %c0_5 = arith.constant 0 : index
    %c0_6 = arith.constant 0 : index
    %6 = arith.index_cast %1 : i32 to index
    %7 = vector.load %arg5[%c0_5, %c0_6, %6] : memref<1x8x128xf32, #tpu.memory_space<vmem>>, vector<1x8x128xf32>
    %8 = vector.shape_cast %7 : vector<1x8x128xf32> to vector<8x128xf32>
    %c0_7 = arith.constant 0 : index
    %c0_8 = arith.constant 0 : index
    %9 = arith.index_cast %1 : i32 to index
    %10 = vector.load %arg6[%c0_7, %c0_8, %9] : memref<1x8x128xf32, #tpu.memory_space<vmem>>, vector<1x8x128xf32>
    %11 = vector.shape_cast %10 : vector<1x8x128xf32> to vector<8x128xf32>
    %cst = arith.constant dense<0.000000e+00> : vector<128x128xf32>
    %12 = tpu.matmul %3, %8, %cst {dimension_numbers = #tpu.dot_dimension_numbers<[0], [0], [1], [1], [0, 1, 1, 1], [], []>, precision = #tpu.contract_precision<fp32>} : vector<8x128xf32>, vector<8x128xf32>, vector<128x128xf32> -> vector<128x128xf32>
    %c0_9 = arith.constant 0 : index
    %c0_10 = arith.constant 0 : index
    %13 = vector.load %arg11[%c0_9, %c0_10] : memref<128x128xf32, #tpu.memory_space<vmem>>, vector<128x128xf32>
    tpu.vector_store %arg11[%c0_9, %c0_10], %12 {strides = array<i32>} : memref<128x128xf32, #tpu.memory_space<vmem>>, vector<128x128xf32>,
    %cst_11 = arith.constant dense<0.000000e+00> : vector<128x128xf32>
    %14 = tpu.matmul %11, %5, %cst_11 {dimension_numbers = #tpu.dot_dimension_numbers<[0], [0], [1], [1], [0, 1, 1, 1], [], []>, precision = #tpu.contract_precision<fp32>} : vector<8x128xf32>, vector<8x128xf32>, vector<128x128xf32> -> vector<128x128xf32>
    %c0_12 = arith.constant 0 : index
    %c0_13 = arith.constant 0 : index
    %15 = vector.load %arg12[%c0_12, %c0_13] : memref<128x128xf32, #tpu.memory_space<vmem>>, vector<128x128xf32>
    tpu.vector_store %arg12[%c0_12, %c0_13], %14 {strides = array<i32>} : memref<128x128xf32, #tpu.memory_space<vmem>>, vector<128x128xf32>,
    %16 = tpu.iota {dimensions = array<i32: 0>} : vector<8x128xi32>
    %cst_14 = arith.constant 3.000000e+38 : f32
    %17 = vector.broadcast %cst_14 : f32 to vector<8x128xf32>
    %c0_i32 = arith.constant 0 : i32
    %18 = vector.broadcast %c0_i32 : i32 to vector<8x128xi32>
    %c0_i32_15 = arith.constant 0 : i32
    %c16_i32 = arith.constant 16 : i32
    %19 = arith.addi %c0_i32_15, %c16_i32 : i32
    %c1_i32 = arith.constant 1 : i32
    %20:2 = scf.for %arg13 = %c0_i32_15 to %19 step %c1_i32 iter_args(%arg14 = %17, %arg15 = %18) -> (vector<8x128xf32>, vector<8x128xi32>)  : i32 {
      %c8_i32_40 = arith.constant 8 : i32
      %69 = arith.muli %arg13, %c8_i32_40 : i32
      %70 = tpu.assume_multiple %69, 8 : i32
      %71 = arith.index_cast %70 : i32 to index
      %c0_41 = arith.constant 0 : index
      %72 = vector.load %arg11[%71, %c0_41] : memref<128x128xf32, #tpu.memory_space<vmem>>, vector<8x128xf32>
      %73 = arith.cmpf olt, %72, %arg14 : vector<8x128xf32>
      %74 = arith.select %73, %72, %arg14 : vector<8x128xi1>, vector<8x128xf32>
      %75 = vector.broadcast %arg13 : i32 to vector<8x128xi32>
      %76 = arith.select %73, %75, %arg15 : vector<8x128xi1>, vector<8x128xi32>
      scf.yield %74, %76 : vector<8x128xf32>, vector<8x128xi32>
    }
    %c16_i32_16 = arith.constant 16 : i32
    %c8_i32 = arith.constant 8 : i32
    %21 = vector.broadcast %c8_i32 : i32 to vector<8x128xi32>
    %22 = arith.muli %20#1, %21 : vector<8x128xi32>
    %23 = arith.addi %22, %16 : vector<8x128xi32>
    %cst_17 = arith.constant dense<0x7F800000> : vector<128xf32>
    %24 = vector.multi_reduction <minimumf>, %20#0, %cst_17 [0] : vector<8x128xf32> to vector<128xf32>
    %25 = vector.shape_cast %24 : vector<128xf32> to vector<1x128xf32>
    %26 = vector.broadcast %25 : vector<1x128xf32> to vector<8x128xf32>
    %27 = arith.cmpf oeq, %20#0, %26 : vector<8x128xf32>
    %c1073741824_i32 = arith.constant 1073741824 : i32
    %28 = vector.broadcast %c1073741824_i32 : i32 to vector<8x128xi32>
    %29 = arith.select %27, %23, %28 : vector<8x128xi1>, vector<8x128xi32>
    %cst_18 = arith.constant dense<2147483647> : vector<128xi32>
    %30 = vector.multi_reduction <minsi>, %29, %cst_18 [0] : vector<8x128xi32> to vector<128xi32>
    %31 = vector.shape_cast %30 : vector<128xi32> to vector<1x128xi32>
    %32 = tpu.iota {dimensions = array<i32: 0>} : vector<8x128xi32>
    %cst_19 = arith.constant 3.000000e+38 : f32
    %33 = vector.broadcast %cst_19 : f32 to vector<8x128xf32>
    %c0_i32_20 = arith.constant 0 : i32
    %34 = vector.broadcast %c0_i32_20 : i32 to vector<8x128xi32>
    %c0_i32_21 = arith.constant 0 : i32
    %c16_i32_22 = arith.constant 16 : i32
    %35 = arith.addi %c0_i32_21, %c16_i32_22 : i32
    %c1_i32_23 = arith.constant 1 : i32
    %36:2 = scf.for %arg13 = %c0_i32_21 to %35 step %c1_i32_23 iter_args(%arg14 = %33, %arg15 = %34) -> (vector<8x128xf32>, vector<8x128xi32>)  : i32 {
      %c8_i32_40 = arith.constant 8 : i32
      %69 = arith.muli %arg13, %c8_i32_40 : i32
      %70 = tpu.assume_multiple %69, 8 : i32
      %71 = arith.index_cast %70 : i32 to index
      %c0_41 = arith.constant 0 : index
      %72 = vector.load %arg12[%71, %c0_41] : memref<128x128xf32, #tpu.memory_space<vmem>>, vector<8x128xf32>
      %73 = arith.cmpf olt, %72, %arg14 : vector<8x128xf32>
      %74 = arith.select %73, %72, %arg14 : vector<8x128xi1>, vector<8x128xf32>
      %75 = vector.broadcast %arg13 : i32 to vector<8x128xi32>
      %76 = arith.select %73, %75, %arg15 : vector<8x128xi1>, vector<8x128xi32>
      scf.yield %74, %76 : vector<8x128xf32>, vector<8x128xi32>
    }
    %c16_i32_24 = arith.constant 16 : i32
    %c8_i32_25 = arith.constant 8 : i32
    %37 = vector.broadcast %c8_i32_25 : i32 to vector<8x128xi32>
    %38 = arith.muli %36#1, %37 : vector<8x128xi32>
    %39 = arith.addi %38, %32 : vector<8x128xi32>
    %cst_26 = arith.constant dense<0x7F800000> : vector<128xf32>
    %40 = vector.multi_reduction <minimumf>, %36#0, %cst_26 [0] : vector<8x128xf32> to vector<128xf32>
    %41 = vector.shape_cast %40 : vector<128xf32> to vector<1x128xf32>
    %42 = vector.broadcast %41 : vector<1x128xf32> to vector<8x128xf32>
    %43 = arith.cmpf oeq, %36#0, %42 : vector<8x128xf32>
    %c1073741824_i32_27 = arith.constant 1073741824 : i32
    %44 = vector.broadcast %c1073741824_i32_27 : i32 to vector<8x128xi32>
    %45 = arith.select %43, %39, %44 : vector<8x128xi1>, vector<8x128xi32>
    %cst_28 = arith.constant dense<2147483647> : vector<128xi32>
    %46 = vector.multi_reduction <minsi>, %45, %cst_28 [0] : vector<8x128xi32> to vector<128xi32>
    %47 = vector.shape_cast %46 : vector<128xi32> to vector<1x128xi32>
    %cst_29 = arith.constant 0.000000e+00 : f32
    %48 = vector.broadcast %cst_29 : f32 to vector<1x128xf32>
    %49 = arith.maximumf %41, %48 : vector<1x128xf32>
    %cst_30 = arith.constant 0.000000e+00 : f32
    %50 = vector.broadcast %cst_30 : f32 to vector<1x128xf32>
    %51 = arith.maximumf %25, %50 : vector<1x128xf32>
    %52 = vector.broadcast %0 : i32 to vector<1x128xi32>
    %53 = arith.addi %47, %52 : vector<1x128xi32>
    %c128_i32_31 = arith.constant 128 : i32
    %54 = arith.muli %arg1, %c128_i32_31 : i32
    %55 = vector.broadcast %54 : i32 to vector<1x128xi32>
    %56 = arith.addi %31, %55 : vector<1x128xi32>
    %c0_i32_32 = arith.constant 0 : i32
    %57 = arith.cmpi eq, %arg2, %c0_i32_32 : i32
    %58 = arith.extui %57 : i1 to i32
    %c0_i32_33 = arith.constant 0 : i32
    %59 = arith.cmpi ne, %58, %c0_i32_33 : i32
    scf.if %59 {
      %69 = vector.shape_cast %49 : vector<1x128xf32> to vector<1x1x128xf32>
      %c0_40 = arith.constant 0 : index
      %c0_41 = arith.constant 0 : index
      %c0_42 = arith.constant 0 : index
      %70 = vector.load %arg7[%c0_40, %c0_41, %c0_42] : memref<1x1x128xf32, #tpu.memory_space<vmem>>, vector<1x1x128xf32>
      tpu.vector_store %arg7[%c0_40, %c0_41, %c0_42], %69 {strides = array<i32>} : memref<1x1x128xf32, #tpu.memory_space<vmem>>, vector<1x1x128xf32>,
      %71 = vector.shape_cast %53 : vector<1x128xi32> to vector<1x1x128xi32>
      %c0_43 = arith.constant 0 : index
      %c0_44 = arith.constant 0 : index
      %c0_45 = arith.constant 0 : index
      %72 = vector.load %arg8[%c0_43, %c0_44, %c0_45] : memref<1x1x128xi32, #tpu.memory_space<vmem>>, vector<1x1x128xi32>
      tpu.vector_store %arg8[%c0_43, %c0_44, %c0_45], %71 {strides = array<i32>} : memref<1x1x128xi32, #tpu.memory_space<vmem>>, vector<1x1x128xi32>,
    } else {
    }
    %c0_i32_34 = arith.constant 0 : i32
    %60 = arith.cmpi sgt, %arg2, %c0_i32_34 : i32
    %61 = arith.extui %60 : i1 to i32
    %c0_i32_35 = arith.constant 0 : i32
    %62 = arith.cmpi ne, %61, %c0_i32_35 : i32
    scf.if %62 {
      %c0_40 = arith.constant 0 : index
      %c0_41 = arith.constant 0 : index
      %c0_42 = arith.constant 0 : index
      %69 = vector.load %arg7[%c0_40, %c0_41, %c0_42] : memref<1x1x128xf32, #tpu.memory_space<vmem>>, vector<1x1x128xf32>
      %70 = vector.shape_cast %49 : vector<1x128xf32> to vector<1x1x128xf32>
      %71 = arith.cmpf olt, %70, %69 : vector<1x1x128xf32>
      %72 = arith.select %71, %70, %69 : vector<1x1x128xi1>, vector<1x1x128xf32>
      %c0_43 = arith.constant 0 : index
      %c0_44 = arith.constant 0 : index
      %c0_45 = arith.constant 0 : index
      %73 = vector.load %arg7[%c0_43, %c0_44, %c0_45] : memref<1x1x128xf32, #tpu.memory_space<vmem>>, vector<1x1x128xf32>
      tpu.vector_store %arg7[%c0_43, %c0_44, %c0_45], %72 {strides = array<i32>} : memref<1x1x128xf32, #tpu.memory_space<vmem>>, vector<1x1x128xf32>,
      %74 = vector.shape_cast %53 : vector<1x128xi32> to vector<1x1x128xi32>
      %c0_46 = arith.constant 0 : index
      %c0_47 = arith.constant 0 : index
      %c0_48 = arith.constant 0 : index
      %75 = vector.load %arg8[%c0_46, %c0_47, %c0_48] : memref<1x1x128xi32, #tpu.memory_space<vmem>>, vector<1x1x128xi32>
      %76 = arith.select %71, %74, %75 : vector<1x1x128xi1>, vector<1x1x128xi32>
      %c0_49 = arith.constant 0 : index
      %c0_50 = arith.constant 0 : index
      %c0_51 = arith.constant 0 : index
      %77 = vector.load %arg8[%c0_49, %c0_50, %c0_51] : memref<1x1x128xi32, #tpu.memory_space<vmem>>, vector<1x1x128xi32>
      tpu.vector_store %arg8[%c0_49, %c0_50, %c0_51], %76 {strides = array<i32>} : memref<1x1x128xi32, #tpu.memory_space<vmem>>, vector<1x1x128xi32>,
    } else {
    }
    %c0_i32_36 = arith.constant 0 : i32
    %63 = arith.cmpi eq, %arg1, %c0_i32_36 : i32
    %64 = arith.extui %63 : i1 to i32
    %c0_i32_37 = arith.constant 0 : i32
    %65 = arith.cmpi ne, %64, %c0_i32_37 : i32
    scf.if %65 {
      %69 = vector.shape_cast %51 : vector<1x128xf32> to vector<1x1x128xf32>
      %c0_40 = arith.constant 0 : index
      %c0_41 = arith.constant 0 : index
      %70 = arith.index_cast %1 : i32 to index
      %71 = vector.load %arg9[%c0_40, %c0_41, %70] : memref<1x1x128xf32, #tpu.memory_space<vmem>>, vector<1x1x128xf32>
      tpu.vector_store %arg9[%c0_40, %c0_41, %70], %69 {strides = array<i32>} : memref<1x1x128xf32, #tpu.memory_space<vmem>>, vector<1x1x128xf32>,
      %72 = vector.shape_cast %56 : vector<1x128xi32> to vector<1x1x128xi32>
      %c0_42 = arith.constant 0 : index
      %c0_43 = arith.constant 0 : index
      %73 = arith.index_cast %1 : i32 to index
      %74 = vector.load %arg10[%c0_42, %c0_43, %73] : memref<1x1x128xi32, #tpu.memory_space<vmem>>, vector<1x1x128xi32>
      tpu.vector_store %arg10[%c0_42, %c0_43, %73], %72 {strides = array<i32>} : memref<1x1x128xi32, #tpu.memory_space<vmem>>, vector<1x1x128xi32>,
    } else {
    }
    %c0_i32_38 = arith.constant 0 : i32
    %66 = arith.cmpi sgt, %arg1, %c0_i32_38 : i32
    %67 = arith.extui %66 : i1 to i32
    %c0_i32_39 = arith.constant 0 : i32
    %68 = arith.cmpi ne, %67, %c0_i32_39 : i32
    scf.if %68 {
      %c0_40 = arith.constant 0 : index
      %c0_41 = arith.constant 0 : index
      %69 = arith.index_cast %1 : i32 to index
      %70 = vector.load %arg9[%c0_40, %c0_41, %69] : memref<1x1x128xf32, #tpu.memory_space<vmem>>, vector<1x1x128xf32>
      %71 = vector.shape_cast %51 : vector<1x128xf32> to vector<1x1x128xf32>
      %72 = arith.cmpf olt, %71, %70 : vector<1x1x128xf32>
      %73 = arith.select %72, %71, %70 : vector<1x1x128xi1>, vector<1x1x128xf32>
      %c0_42 = arith.constant 0 : index
      %c0_43 = arith.constant 0 : index
      %74 = arith.index_cast %1 : i32 to index
      %75 = vector.load %arg9[%c0_42, %c0_43, %74] : memref<1x1x128xf32, #tpu.memory_space<vmem>>, vector<1x1x128xf32>
      tpu.vector_store %arg9[%c0_42, %c0_43, %74], %73 {strides = array<i32>} : memref<1x1x128xf32, #tpu.memory_space<vmem>>, vector<1x1x128xf32>,
      %76 = vector.shape_cast %56 : vector<1x128xi32> to vector<1x1x128xi32>
      %c0_44 = arith.constant 0 : index
      %c0_45 = arith.constant 0 : index
      %77 = arith.index_cast %1 : i32 to index
      %78 = vector.load %arg10[%c0_44, %c0_45, %77] : memref<1x1x128xi32, #tpu.memory_space<vmem>>, vector<1x1x128xi32>
      %79 = arith.select %72, %76, %78 : vector<1x1x128xi1>, vector<1x1x128xi32>
      %c0_46 = arith.constant 0 : index
      %c0_47 = arith.constant 0 : index
      %80 = arith.index_cast %1 : i32 to index
      %81 = vector.load %arg10[%c0_46, %c0_47, %80] : memref<1x1x128xi32, #tpu.memory_space<vmem>>, vector<1x1x128xi32>
      tpu.vector_store %arg10[%c0_46, %c0_47, %80], %79 {strides = array<i32>} : memref<1x1x128xi32, #tpu.memory_space<vmem>>, vector<1x1x128xi32>,
    } else {
    }
    return
  }
  func.func @transform_0(%arg0: i32, %arg1: i32, %arg2: i32) -> (i32, i32, i32) {
    %c0_i32 = arith.constant 0 : i32
    %c0_i32_0 = arith.constant 0 : i32
    return %arg0, %c0_i32, %arg1 : i32, i32, i32
  }
  func.func @transform_1(%arg0: i32, %arg1: i32, %arg2: i32) -> (i32, i32, i32) {
    %c0_i32 = arith.constant 0 : i32
    %c0_i32_0 = arith.constant 0 : i32
    return %arg0, %c0_i32, %arg1 : i32, i32, i32
  }
  func.func @transform_2(%arg0: i32, %arg1: i32, %arg2: i32) -> (i32, i32, i32) {
    %c0_i32 = arith.constant 0 : i32
    %c0_i32_0 = arith.constant 0 : i32
    %c0_i32_1 = arith.constant 0 : i32
    return %arg0, %c0_i32, %c0_i32_0 : i32, i32, i32
  }
  func.func @transform_3(%arg0: i32, %arg1: i32, %arg2: i32) -> (i32, i32, i32) {
    %c0_i32 = arith.constant 0 : i32
    %c0_i32_0 = arith.constant 0 : i32
    %c0_i32_1 = arith.constant 0 : i32
    return %arg0, %c0_i32, %c0_i32_0 : i32, i32, i32
  }
  func.func @transform_4(%arg0: i32, %arg1: i32, %arg2: i32) -> (i32, i32, i32) {
    %c0_i32 = arith.constant 0 : i32
    %c0_i32_0 = arith.constant 0 : i32
    return %arg0, %c0_i32, %arg1 : i32, i32, i32
  }
  func.func @transform_5(%arg0: i32, %arg1: i32, %arg2: i32) -> (i32, i32, i32) {
    %c0_i32 = arith.constant 0 : i32
    %c0_i32_0 = arith.constant 0 : i32
    return %arg0, %c0_i32, %arg1 : i32, i32, i32
  }
  func.func @transform_6(%arg0: i32, %arg1: i32, %arg2: i32) -> (i32, i32, i32) {
    %c0_i32 = arith.constant 0 : i32
    %c0_i32_0 = arith.constant 0 : i32
    %c0_i32_1 = arith.constant 0 : i32
    return %arg0, %c0_i32, %c0_i32_0 : i32, i32, i32
  }
  func.func @transform_7(%arg0: i32, %arg1: i32, %arg2: i32) -> (i32, i32, i32) {
    %c0_i32 = arith.constant 0 : i32
    %c0_i32_0 = arith.constant 0 : i32
    %c0_i32_1 = arith.constant 0 : i32
    return %arg0, %c0_i32, %c0_i32_0 : i32, i32, i32
  }
}

</mosaic_0001>

<bundles_post_ra>
// kernel: tpu_custom_call.1
= control target key start
LH: loop header
LB: loop body
LE: loop exit
PB: predicated region body
PF: predicated region fallthrough
CT: control target
= control target key end

     0   :  { %s3631_s0 = inlined_call_operand.hbm [shape: f32[2,8,128], index: 0, kind: input, shape index: {}]   ;;  %s3632_s1 = inlined_call_operand.hbm [shape: f32[2,8,128], index: 1, kind: input, shape index: {}]   ;;  %s3633_s2 = inlined_call_operand.hbm [shape: f32[2,8,128], index: 2, kind: input, shape index: {}]   ;;  %s3634_s3 = inlined_call_operand.hbm [shape: f32[2,8,128], index: 3, kind: input, shape index: {}]   ;;  %s3635_s4 = inlined_call_operand.hbm [shape: f32[2,1,128], index: 4, kind: output, shape index: {0}]   ;;  %s3636_s5 = inlined_call_operand.hbm [shape: s32[2,1,128], index: 5, kind: output, shape index: {1}]   ;;  %s3637_s6 = inlined_call_operand.hbm [shape: f32[2,1,128], index: 6, kind: output, shape index: {2}]   ;;  %s3638_s7 = inlined_call_operand.hbm [shape: s32[2,1,128], index: 7, kind: output, shape index: {3}]  }
   0x1   :  { %3662 = sst [smem:[#allocation31_spill]] %s3631_s0 }
   0x2   :  { %3663 = sst [smem:[#allocation32_spill]] %s3632_s1 }
   0x3   :  { %3664 = sst [smem:[#allocation33_spill]] %s3637_s6 }
   0x4   :  { %13 = vsyncpa [#allocation5], 0 }
   0x5   :  { %15 = vsyncpa [#allocation5 + $0x1], 0 }
   0x6   :  { %16 = vsyncpa [#allocation8], 0 }
   0x7   :  { %18 = vsyncpa [#allocation8 + $0x1], 0 }
   0x8   :  { %19 = vsyncpa [#allocation11], 0 }
   0x9   :  { %21 = vsyncpa [#allocation11 + $0x1], 0 }
   0xa   :  { %22 = vsyncpa [#allocation6], 0 }
   0xb   :  { %24 = vsyncpa [#allocation6 + $0x1], 0 }
   0xc   :  { %25 = vsyncpa [#allocation14], 0 }
   0xd   :  { %27 = vsyncpa [#allocation14 + $0x1], 0 }
   0xe   :  { %28 = vsyncpa [#allocation17], 0 }
   0xf   :  { %30 = vsyncpa [#allocation17 + $0x1], 0  ;;  %s2882_s24 = smov 0   ;;  %s2884_s25 = smov 0  }
  0x10   :  { %s2886_s26 = smov 0   ;;  %s2888_s27 = smov 0  }
  0x11   :  { %s2890_s28 = smov 0   ;;  %s2892_s29 = smov 0  }
  0x12 LB: > { %3665 = sst [smem:[#allocation24_spill]] %s2796_s24  ;;  %s2913_s30 = sadd.s32 4294967295, %s2816_s29   ;;  %s2816_s29 = sphi %s2892_s29, %s36_s29   ;;  %s2812_s28 = sphi %s2890_s28, %s3702_s28   ;;  %s2808_s27 = sphi %s2888_s27, %s3701_s27   ;;  %s2804_s26 = sphi %s2886_s26, %s3700_s26   ;;  %s2800_s25 = sphi %s2884_s25, %s3704_s25   ;;  %s2796_s24 = sphi %s2882_s24, %s3703_s24  }
  0x13   : > { %3666 = sst [smem:[#allocation25_spill]] %s2804_s26  ;;  %s3639_s8 = sadd.s32 4294967294, %s2816_s29  }
  0x14   : > { %3667 = sst [smem:[#allocation26_spill]] %s2812_s28  ;;  %s55_s9 = sadd.s32 1, %s2812_s28 }
  0x15   : > { %3668 = sst [smem:[#allocation27_spill]] %s2816_s29  ;;  %s64_s10 = sadd.s32 1, %s2804_s26 }
  0x16   : > { %p57_p0 = scmp.ge.s32.totalorder %s55_s9, 2  ;;  %p71_p1 = scmp.ne.s32.totalorder %s2804_s26, %s2800_s25 }
  0x17   : > { %p72_p2 = scmp.eq.s32.totalorder %s2816_s29, 0  ;;  %p77_p3 = scmp.ne.s32.totalorder %s2800_s25, %s2796_s24 }
  0x18   : > { %s3706_s9 = smov (%p57_p0, %s55_s9), 0  ;;  %p78_p5 = scmp.eq.s32.totalorder %s2913_s30, 0 }
  0x19   : > { %3669 = sst [smem:[#allocation28_spill]] %s3706_s9  ;;  %p2925_p4 = por %p72_p2, %p71_p1 }
  0x1a   : > { %s59_s12 = ssub.s32 %s2812_s28, %s3706_s9  ;;  %p183_p6 = scmp.eq.s32.totalorder %s2913_s30, 1 }
  0x1b   : > { %p62_p7 = scmp.eq.s32.totalorder %s59_s12, 0  ;;  %p2933_p8 = por %p78_p5, %p77_p3 }
  0x1c   : > { %p2937_p9 = por %p183_p6, %p71_p1  ;;  %p189_p10 = scmp.eq.s32.totalorder %s3639_s8, 1 }
  0x1d   : > { %s2944_s15 = scalar_select %p62_p7, %s2804_s26, %s64_s10  }
  0x1e   : > { %p2946_p11 = por %p189_p10, %p77_p3  ;;  %p2331_p12 = scmp.ge.s32.totalorder %s2816_s29, 2 }
  0x1f   : > { %3673 = sst [smem:[#allocation29_spill]] %s2944_s15  ;;  %p2391_p13 = scmp.lt.s32.totalorder %s2816_s29, 2 }
  0x20   : > { %s3674_s16 = scalar_select %p2946_p11, 1, 0 }
  0x21   : > { %s2953_s17 = sand.u32 1, %s2804_s26   ;;  %s2959_s19 = sshll.u32 %s2812_s28, 3 }
  0x22   : > { %3675 = sst [smem:[#allocation30_spill]] %s3674_s16  ;;  %s2956_s18 = sshll.u32 %s2953_s17, 3 }
  0x23   : > { %p2963_p0 = pnand %p2391_p13, %p2925_p4  ;;  %s309_s21 = sand.u32 1, %s2816_s29  }
  0x24   : > { %s3677_s1 = sld [smem:[#allocation32_spill]]  ;;  %s313_s8 = scalar_lea.vmem [#allocation7], %s2956_s18 }
  0x25   : > { %s322_s9 = sshll.u32 %s313_s8, 4  ;;  %s310_s11 = scalar_lea.sflag [#allocation8], %s309_s21  ;;  %s323_s9 = int_to_ptr.vmem [resolvable:$true] %s322_s9 }
  0x26   : > { %p2340_p1 = scmp.ge.s32.totalorder %s2816_s29, 1  ;;  %p365_p2 = scmp.lt.s32.totalorder %s2816_s29, 3 }
  0x27   : > { %s3679_s0 = sld [smem:[#allocation31_spill]]  ;;  %s337_s26 = scalar_lea.hbm %s3633_s2, %s2959_s19 }
  0x28   : > { %p2977_p3 = pnand %p2340_p1, %p365_p2  ;;  %s339_s29 = sshll.u32 %s337_s26, 4  ;;  %s340_s29 = int_to_ptr.hbm [resolvable:$true] %s339_s29 }
  0x29   : > { %s333_s16 = scalar_lea.vmem [#allocation9], %s2956_s18  ;;  %s3007_s26 = sand.u32 (!%p2977_p3), 1, %s2800_s25  }
  0x2a   : > { %s318_s10 = scalar_lea.hbm %s3677_s1, %s2959_s19  ;;  %s293_s1 = scalar_lea.vmem [#allocation4], %s2956_s18 }
  0x2b   : > { %s320_s12 = sshll.u32 %s318_s10, 4  ;;  %s302_s15 = sshll.u32 %s293_s1, 4  ;;  %s321_s12 = int_to_ptr.hbm [resolvable:$true] %s320_s12  ;;  %s303_s15 = int_to_ptr.vmem [resolvable:$true] %s302_s15 }
  0x2c   : > { %2371 = dma.hbm_to_vmem [thread:$0]  (!%p2963_p0), %s321_s12, 128, %s323_s9, %s310_s11  }
  0x2d   : > { %s298_s10 = scalar_lea.hbm %s3679_s0, %s2959_s19  ;;  %s290_s9 = scalar_lea.sflag [#allocation5], %s2953_s17 }
  0x2e   : > { %s300_s8 = sshll.u32 %s298_s10, 4  ;;  %s341_s22 = sshll.u32 %s333_s16, 4  ;;  %s301_s8 = int_to_ptr.hbm [resolvable:$true] %s300_s8  ;;  %s342_s22 = int_to_ptr.vmem [resolvable:$true] %s341_s22 }
  0x2f   : > { %2368 = dma.hbm_to_vmem [thread:$0]  (!%p2963_p0), %s301_s8, 128, %s303_s15, %s290_s9  }
  0x30   : > { %2374 = dma.hbm_to_vmem [thread:$0]  (!%p2963_p0), %s340_s29, 128, %s342_s22, %s310_s11  }
  0x31   : > { %s356_s10 = scalar_lea.hbm %s3634_s3, %s2959_s19  ;;  %s352_s0 = scalar_lea.vmem [#allocation10], %s2956_s18 }
  0x32   : > { %s360_s24 = sshll.u32 %s352_s0, 4  ;;  %s358_s6 = sshll.u32 %s356_s10, 4  ;;  %s361_s24 = int_to_ptr.vmem [resolvable:$true] %s360_s24  ;;  %s359_s6 = int_to_ptr.hbm [resolvable:$true] %s358_s6 }
  0x33   : > { %s349_s15 = scalar_lea.sflag [#allocation11], %s2953_s17  ;;  %369 = sbr.rel (%p2977_p3) target bundleno = 844 (0x34c), region = 36 }
  0x34   : > { %2377 = dma.hbm_to_vmem [thread:$0]  (!%p2963_p0), %s359_s6, 128, %s361_s24, %s349_s15  }
  0x35   : > { %s3010_s29 = sshll.u32 (!%p2977_p3), %s3007_s26, 3  ;;  %s372_s16 = scalar_lea.sflag (!%p2977_p3), [#allocation5], %s3007_s26 }
  0x36   : > { %s375_s0 = scalar_lea.vmem (!%p2977_p3), [#allocation4], %s3010_s29 }
  0x38   : > { %2771 = dma.done.wait (%p2933_p8), %s372_s16, 128  }
  0x39   : > { %2773 = vsyncadd (%p2933_p8), %s372_s16, 4294967168  ;;  %s381_s6 = sand.u32 1, %s2913_s30   ;;  %s385_s28 = scalar_lea.vmem [#allocation7], %s3010_s29 }
  0x3a   : > { %s382_s24 = scalar_lea.sflag [#allocation8], %s381_s6 }
  0x3b   : > { %2775 = dma.done.wait (%p2933_p8), %s382_s24, 256  }
  0x3c   : > { %2777 = vsyncadd (%p2933_p8), %s382_s24, 4294967040  ;;  %s395_s17 = scalar_lea.vmem [#allocation9], %s3010_s29  ;;  %s402_s18 = scalar_lea.sflag [#allocation11], %s3007_s26 }
  0x3d   : > { %s405_s19 = scalar_lea.vmem [#allocation10], %s3010_s29 }
  0x3e   : > { %2779 = dma.done.wait (%p2933_p8), %s402_s18, 128  }
  0x3f   : > { %2781 = vsyncadd (%p2933_p8), %s402_s18, 4294967168  ;;  %v464_v0 = vld [vmem:[%s375_s0] sm:$0xff]  ;;  %v471_v2 = vld [vmem:[%s405_s19] sm:$0xff]  ;;  %vm504_vm0 = vcmask 64512   ;;  %s444_s13 = scalar_lea.vmem [#allocation12], %s3007_s26  ;;  %s450_s20 = scalar_lea.vmem [#allocation13], %s3007_s26 }
  0x40   : > { %472 = vxpose.xlu0.b32.start.end [1/1] (short) %v464_v0, 128  ;;  %v469_v1 = vld [vmem:[%s395_s17] sm:$0xff]  ;;  %v465_v8 = vld [vmem:[%s385_s28] sm:$0xff]  ;;  %s456_s11 = scalar_lea.vmem [#allocation15], %s3007_s26  ;;  %s462_s8 = scalar_lea.vmem [#allocation16], %s3007_s26 }
  0x41   : > { %v568_v3 = vand.u32 4294901760, %v469_v1  ;;  %v1275_v9 = vand.u32 4294901760, %v465_v8  ;;  %s2826_s9 = smov 0  }
  0x43   : > { %v715_v4 = vsub.f32 %v469_v1, %v568_v3  ;;  %900 = vmatpush.msra.mxu3 %v568_v3  ;;  %569 = vmatpush.msra.mxu0 %v568_v3  ;;  %v1422_v10 = vsub.f32 %v465_v8, %v1275_v9 }
  0x45   : > { %v716_v5 = vand.u32 4294901760, %v715_v4  ;;  %802 = vmatpush.msra.mxu2 %v715_v4  ;;  %v1423_v11 = vand.u32 4294901760, %v1422_v10 }
  0x47   : > { %v717_v6 = vsub.f32 %v715_v4, %v716_v5  ;;  %1016 = vmatpush.msrb.mxu0 %v716_v5  ;;  %1276 = vmatpush.msrb.mxu2 %v1275_v9  ;;  %v1424_v12 = vsub.f32 %v1422_v10, %v1423_v11 }
  0x49   : > { %v718_v7 = vand.u32 4294901760, %v717_v6  ;;  %v1425_v13 = vand.u32 4294901760, %v1424_v12 }
  0x4b   : > { %719 = vmatpush.msra.mxu1 %v718_v7  ;;  %1426 = vmatpush.msrb.mxu3 %v1425_v13 }
  0x4d   : > { %1098 = vmatpush.msrb.mxu1 %v568_v3 }
  0xc0   : > { %1180 = vxpose.xlu0.b32.start.end [1/1] (short) %v471_v2, 128 }
  0xe4   : > { %v488_v14 = vpop.trf.xlu0 }
  0xe5   : > { %v506_v15 = vsel %vm504_vm0, %v488_v14, 0 }
  0xe6   : > { %v3034_v16 = vand.u32 4294901760, %v506_v15 }
  0xe8   : > { %v571_v17 = vsub.f32 %v506_v15, %v3034_v16  ;;  %721 = vmatmul.f32.vlgmr.msra.gmra.mxu1 %v3034_v16 }
  0xe9   : > { %1607 = vmatpush.msra.mxu1 %v1275_v9 }
  0xea   : > { %805 = vmatmul.f32.vlgmr.msra.gmra.mxu2 %v571_v17  ;;  %v572_v18 = vand.u32 4294901760, %v571_v17 }
  0xeb   : > { %1723 = vmatpush.msra.mxu2 %v1423_v11 }
  0xec   : > { %904 = vmatmul.f32.vlgmr.msra.gmra.mxu3 %v572_v18  ;;  %v489_v19 = vpop.trf.xlu0  ;;  %v573_v20 = vsub.f32 %v571_v17, %v572_v18 }
  0xed   : > { %v509_v21 = vsel %vm504_vm0, %v489_v19, 0  ;;  %1805 = vmatpush.msra.mxu3 %v1275_v9 }
  0xee   : > { %v3039_v22 = vand.u32 4294901760, %v509_v21  ;;  %v574_v23 = vand.u32 4294901760, %v573_v20 }
  0xf0   : > { %v579_v24 = vsub.f32 %v509_v21, %v3039_v22  ;;  %575 = vmatmul.f32.vlgmr.msra.gmra.mxu0 %v574_v23  ;;  %725 = vmatmul.f32.gmra.mxu1 %v3039_v22 }
  0xf1   : > { %1509 = vmatpush.msra.mxu0 %v1422_v10 }
  0xf2   : > { %810 = vmatmul.f32.gmra.mxu2 %v579_v24  ;;  %v580_v25 = vand.u32 4294901760, %v579_v24 }
  0xf4   : > { %910 = vmatmul.f32.gmra.mxu3 %v580_v25  ;;  %v490_v26 = vpop.trf.xlu0  ;;  %v581_v27 = vsub.f32 %v579_v24, %v580_v25 }
  0xf5   : > { %v512_v28 = vsel %vm504_vm0, %v490_v26, 0 }
  0xf6   : > { %v3044_v29 = vand.u32 4294901760, %v512_v28  ;;  %v582_v30 = vand.u32 4294901760, %v581_v27 }
  0xf8   : > { %v587_v31 = vsub.f32 %v512_v28, %v3044_v29  ;;  %583 = vmatmul.f32.gmra.mxu0 %v582_v30  ;;  %729 = vmatmul.f32.gmra.mxu1 %v3044_v29 }
  0xfa   : > { %815 = vmatmul.f32.gmra.mxu2 %v587_v31  ;;  %v588_v32 = vand.u32 4294901760, %v587_v31 }
  0xfc   : > { %916 = vmatmul.f32.gmra.mxu3 %v588_v32  ;;  %v491_v33 = vpop.trf.xlu0  ;;  %v589_v34 = vsub.f32 %v587_v31, %v588_v32 }
  0xfd   : > { %v515_v35 = vsel %vm504_vm0, %v491_v33, 0 }
  0xfe   : > { %v3049_v36 = vand.u32 4294901760, %v515_v35  ;;  %v590_v37 = vand.u32 4294901760, %v589_v34 }
 0x100   : > { %v595_v38 = vsub.f32 %v515_v35, %v3049_v36  ;;  %591 = vmatmul.f32.gmra.mxu0 %v590_v37  ;;  %733 = vmatmul.f32.gmra.mxu1 %v3049_v36 }
 0x102   : > { %820 = vmatmul.f32.gmra.mxu2 %v595_v38  ;;  %v596_v39 = vand.u32 4294901760, %v595_v38 }
 0x104   : > { %922 = vmatmul.f32.gmra.mxu3 %v596_v39  ;;  %v492_v40 = vpop.trf.xlu0  ;;  %v597_v41 = vsub.f32 %v595_v38, %v596_v39 }
 0x105   : > { %v518_v42 = vsel %vm504_vm0, %v492_v40, 0 }
 0x106   : > { %v3054_v43 = vand.u32 4294901760, %v518_v42  ;;  %v598_v44 = vand.u32 4294901760, %v597_v41 }
 0x108   : > { %v603_v45 = vsub.f32 %v518_v42, %v3054_v43  ;;  %599 = vmatmul.f32.gmra.mxu0 %v598_v44  ;;  %737 = vmatmul.f32.gmra.mxu1 %v3054_v43 }
 0x10a   : > { %825 = vmatmul.f32.gmra.mxu2 %v603_v45  ;;  %v604_v46 = vand.u32 4294901760, %v603_v45 }
 0x10c   : > { %928 = vmatmul.f32.gmra.mxu3 %v604_v46  ;;  %v493_v47 = vpop.trf.xlu0  ;;  %v605_v48 = vsub.f32 %v603_v45, %v604_v46 }
 0x10d   : > { %v521_v49 = vsel %vm504_vm0, %v493_v47, 0 }
 0x10e   : > { %v3059_v50 = vand.u32 4294901760, %v521_v49  ;;  %v606_v51 = vand.u32 4294901760, %v605_v48 }
 0x110   : > { %v611_v52 = vsub.f32 %v521_v49, %v3059_v50  ;;  %607 = vmatmul.f32.gmra.mxu0 %v606_v51  ;;  %741 = vmatmul.f32.gmra.mxu1 %v3059_v50 }
 0x112   : > { %830 = vmatmul.f32.gmra.mxu2 %v611_v52  ;;  %v612_v53 = vand.u32 4294901760, %v611_v52 }
 0x114   : > { %934 = vmatmul.f32.gmra.mxu3 %v612_v53  ;;  %v494_v54 = vpop.trf.xlu0  ;;  %v613_v55 = vsub.f32 %v611_v52, %v612_v53 }
 0x115   : > { %v524_v56 = vsel %vm504_vm0, %v494_v54, 0 }
 0x116   : > { %v3064_v57 = vand.u32 4294901760, %v524_v56  ;;  %v614_v58 = vand.u32 4294901760, %v613_v55 }
 0x118   : > { %v619_v59 = vsub.f32 %v524_v56, %v3064_v57  ;;  %615 = vmatmul.f32.gmra.mxu0 %v614_v58  ;;  %745 = vmatmul.f32.gmra.mxu1 %v3064_v57 }
 0x11a   : > { %835 = vmatmul.f32.gmra.mxu2 %v619_v59  ;;  %v620_v60 = vand.u32 4294901760, %v619_v59 }
 0x11c   : > { %940 = vmatmul.f32.gmra.mxu3 %v620_v60  ;;  %v495_v61 = vpop.trf.xlu0  ;;  %v621_v62 = vsub.f32 %v619_v59, %v620_v60 }
 0x11d   : > { %v527_v63 = vsel %vm504_vm0, %v495_v61, 0 }
 0x11e   : > { %v3069_v0 = vand.u32 4294901760, %v527_v63  ;;  %v622_v1 = vand.u32 4294901760, %v621_v62 }
 0x120   : > { %v627_v2 = vsub.f32 %v527_v63, %v3069_v0  ;;  %623 = vmatmul.f32.gmra.mxu0 %v622_v1  ;;  %749 = vmatmul.f32.gmra.mxu1 %v3069_v0 }
 0x122   : > { %840 = vmatmul.f32.gmra.mxu2 %v627_v2  ;;  %v628_v3 = vand.u32 4294901760, %v627_v2 }
 0x124   : > { %946 = vmatmul.f32.gmra.mxu3 %v628_v3  ;;  %v496_v4 = vpop.trf.xlu0  ;;  %v629_v5 = vsub.f32 %v627_v2, %v628_v3 }
 0x125   : > { %v530_v6 = vsel %vm504_vm0, %v496_v4, 0 }
 0x126   : > { %v3074_v7 = vand.u32 4294901760, %v530_v6  ;;  %v630_v8 = vand.u32 4294901760, %v629_v5 }
 0x128   : > { %v635_v9 = vsub.f32 %v530_v6, %v3074_v7  ;;  %631 = vmatmul.f32.gmra.mxu0 %v630_v8  ;;  %753 = vmatmul.f32.gmra.mxu1 %v3074_v7 }
 0x12a   : > { %845 = vmatmul.f32.gmra.mxu2 %v635_v9  ;;  %v636_v10 = vand.u32 4294901760, %v635_v9 }
 0x12c   : > { %952 = vmatmul.f32.gmra.mxu3 %v636_v10  ;;  %v497_v11 = vpop.trf.xlu0  ;;  %v637_v12 = vsub.f32 %v635_v9, %v636_v10 }
 0x12d   : > { %v533_v13 = vsel %vm504_vm0, %v497_v11, 0 }
 0x12e   : > { %v3079_v14 = vand.u32 4294901760, %v533_v13  ;;  %v638_v15 = vand.u32 4294901760, %v637_v12 }
 0x130   : > { %v643_v17 = vsub.f32 %v533_v13, %v3079_v14  ;;  %639 = vmatmul.f32.gmra.mxu0 %v638_v15  ;;  %757 = vmatmul.f32.gmra.mxu1 %v3079_v14 }
 0x132   : > { %850 = vmatmul.f32.gmra.mxu2 %v643_v17  ;;  %v644_v18 = vand.u32 4294901760, %v643_v17 }
 0x134   : > { %958 = vmatmul.f32.gmra.mxu3 %v644_v18  ;;  %v498_v19 = vpop.trf.xlu0  ;;  %v645_v20 = vsub.f32 %v643_v17, %v644_v18 }
 0x135   : > { %v536_v21 = vsel %vm504_vm0, %v498_v19, 0 }
 0x136   : > { %v3084_v23 = vand.u32 4294901760, %v536_v21  ;;  %v646_v24 = vand.u32 4294901760, %v645_v20 }
 0x138   : > { %v651_v25 = vsub.f32 %v536_v21, %v3084_v23  ;;  %647 = vmatmul.f32.gmra.mxu0 %v646_v24  ;;  %761 = vmatmul.f32.gmra.mxu1 %v3084_v23 }
 0x13a   : > { %855 = vmatmul.f32.gmra.mxu2 %v651_v25  ;;  %v652_v26 = vand.u32 4294901760, %v651_v25 }
 0x13c   : > { %964 = vmatmul.f32.gmra.mxu3 %v652_v26  ;;  %v499_v27 = vpop.trf.xlu0  ;;  %v653_v28 = vsub.f32 %v651_v25, %v652_v26 }
 0x13d   : > { %v539_v30 = vsel %vm504_vm0, %v499_v27, 0 }
 0x13e   : > { %v3089_v31 = vand.u32 4294901760, %v539_v30  ;;  %v654_v32 = vand.u32 4294901760, %v653_v28 }
 0x140   : > { %v659_v33 = vsub.f32 %v539_v30, %v3089_v31  ;;  %655 = vmatmul.f32.gmra.mxu0 %v654_v32  ;;  %765 = vmatmul.f32.gmra.mxu1 %v3089_v31 }
 0x142   : > { %860 = vmatmul.f32.gmra.mxu2 %v659_v33  ;;  %v660_v34 = vand.u32 4294901760, %v659_v33 }
 0x144   : > { %970 = vmatmul.f32.gmra.mxu3 %v660_v34  ;;  %v500_v35 = vpop.trf.xlu0  ;;  %v661_v37 = vsub.f32 %v659_v33, %v660_v34 }
 0x145   : > { %v542_v38 = vsel %vm504_vm0, %v500_v35, 0 }
 0x146   : > { %v3094_v39 = vand.u32 4294901760, %v542_v38  ;;  %v662_v40 = vand.u32 4294901760, %v661_v37 }
 0x148   : > { %v667_v41 = vsub.f32 %v542_v38, %v3094_v39  ;;  %663 = vmatmul.f32.gmra.mxu0 %v662_v40  ;;  %769 = vmatmul.f32.gmra.mxu1 %v3094_v39 }
 0x14a   : > { %865 = vmatmul.f32.gmra.mxu2 %v667_v41  ;;  %v668_v42 = vand.u32 4294901760, %v667_v41 }
 0x14c   : > { %976 = vmatmul.f32.gmra.mxu3 %v668_v42  ;;  %v501_v44 = vpop.trf.xlu0  ;;  %v669_v45 = vsub.f32 %v667_v41, %v668_v42 }
 0x14d   : > { %v545_v46 = vsel %vm504_vm0, %v501_v44, 0 }
 0x14e   : > { %v3099_v47 = vand.u32 4294901760, %v545_v46  ;;  %v670_v48 = vand.u32 4294901760, %v669_v45 }
 0x150   : > { %v675_v49 = vsub.f32 %v545_v46, %v3099_v47  ;;  %671 = vmatmul.f32.gmra.mxu0 %v670_v48  ;;  %773 = vmatmul.f32.gmra.mxu1 %v3099_v47 }
 0x152   : > { %870 = vmatmul.f32.gmra.mxu2 %v675_v49  ;;  %v676_v51 = vand.u32 4294901760, %v675_v49 }
 0x154   : > { %982 = vmatmul.f32.gmra.mxu3 %v676_v51  ;;  %v502_v52 = vpop.trf.xlu0  ;;  %v677_v53 = vsub.f32 %v675_v49, %v676_v51 }
 0x155   : > { %v548_v54 = vsel %vm504_vm0, %v502_v52, 0 }
 0x156   : > { %v3104_v55 = vand.u32 4294901760, %v548_v54  ;;  %v678_v56 = vand.u32 4294901760, %v677_v53 }
 0x158   : > { %v683_v58 = vsub.f32 %v548_v54, %v3104_v55  ;;  %679 = vmatmul.f32.gmra.mxu0 %v678_v56  ;;  %777 = vmatmul.f32.gmra.mxu1 %v3104_v55 }
 0x15a   : > { %875 = vmatmul.f32.gmra.mxu2 %v683_v58  ;;  %v684_v59 = vand.u32 4294901760, %v683_v58 }
 0x15c   : > { %988 = vmatmul.f32.gmra.mxu3 %v684_v59  ;;  %v503_v60 = vpop.trf.xlu0  ;;  %v685_v61 = vsub.f32 %v683_v58, %v684_v59 }
 0x15d   : > { %v551_v62 = vsel %vm504_vm0, %v503_v60, 0 }
 0x15e   : > { %v3109_v63 = vand.u32 4294901760, %v551_v62  ;;  %v686_v1 = vand.u32 4294901760, %v685_v61 }
 0x160   : > { %v691_v2 = vsub.f32 %v551_v62, %v3109_v63  ;;  %687 = vmatmul.f32.gmra.mxu0 %v686_v1  ;;  %781 = vmatmul.f32.gmra.mxu1 %v3109_v63 }
 0x162   : > { %880 = vmatmul.f32.gmra.mxu2 %v691_v2  ;;  %v692_v3 = vand.u32 4294901760, %v691_v2 }
 0x164   : > { %994 = vmatmul.f32.gmra.mxu3 %v692_v3  ;;  %v1196_v4 = vpop.trf.xlu0  ;;  %v693_v5 = vsub.f32 %v691_v2, %v692_v3 }
 0x165   : > { %v1213_v6 = vsel %vm504_vm0, %v1196_v4, 0  ;;  %v722_v8 = vpop.f32.mrf.mxu1 }
 0x166   : > { %v3114_v9 = vand.u32 4294901760, %v1213_v6  ;;  %v694_v10 = vand.u32 4294901760, %v693_v5 }
 0x168   : > { %v3117_v11 = vsub.f32 %v1213_v6, %v3114_v9  ;;  %695 = vmatmul.f32.gmra.mxu0 %v694_v10  ;;  %1100 = vmatmul.f32.vlgmr.msrb.gmra.mxu1 %v3034_v16 }
 0x16a   : > { %v1279_v12 = vand.u32 4294901760, %v3117_v11 }
 0x16c   : > { %1428 = vmatmul.f32.vlgmr.msrb.gmra.mxu3 %v3114_v9  ;;  %v1197_v13 = vpop.trf.xlu0  ;;  %v1280_v15 = vsub.f32 %v3117_v11, %v1279_v12 }
 0x16d   : > { %v1216_v17 = vsel %vm504_vm0, %v1197_v13, 0  ;;  %v576_v18 = vpop.f32.mrf.mxu0  ;;  %v726_v19 = vpop.f32.mrf.mxu1 }
 0x16e   : > { %v3126_v20 = vand.u32 4294901760, %v1216_v17  ;;  %v723_v21 = vadd.f32 %v722_v8, %v576_v18  ;;  %v806_v24 = vpop.f32.mrf.mxu2  ;;  %v1281_v25 = vand.u32 4294901760, %v1280_v15 }
 0x16f   : > { %v905_v26 = vpop.f32.mrf.mxu3 }
 0x170   : > { %v3129_v27 = vsub.f32 %v1216_v17, %v3126_v20  ;;  %v807_v28 = vadd.f32 %v806_v24, %v723_v21  ;;  %1018 = vmatmul.f32.vlgmr.msrb.gmra.mxu0 %v3034_v16  ;;  %1104 = vmatmul.f32.gmra.mxu1 %v3039_v22 }
 0x171   : > { %1282 = vmatmul.f32.vlgmr.msrb.gmra.mxu2 %v1281_v25 }
 0x172   : > { %v3133_v30 = vadd.f32 %v905_v26, %v807_v28  ;;  %v1287_v32 = vand.u32 4294901760, %v3129_v27 }
 0x174   : > { %1432 = vmatmul.f32.gmra.mxu3 %v3126_v20  ;;  %v1198_v33 = vpop.trf.xlu0  ;;  %v1288_v34 = vsub.f32 %v3129_v27, %v1287_v32 }
 0x175   : > { %v1219_v35 = vsel %vm504_vm0, %v1198_v33, 0  ;;  %v584_v37 = vpop.f32.mrf.mxu0  ;;  %v730_v38 = vpop.f32.mrf.mxu1 }
 0x176   : > { %v3141_v40 = vand.u32 4294901760, %v1219_v35  ;;  %v727_v16 = vadd.f32 %v726_v19, %v584_v37  ;;  %v811_v41 = vpop.f32.mrf.mxu2  ;;  %v1289_v42 = vand.u32 4294901760, %v1288_v34 }
 0x177   : > { %v911_v44 = vpop.f32.mrf.mxu3 }
 0x178   : > { %v3144_v45 = vsub.f32 %v1219_v35, %v3141_v40  ;;  %v812_v46 = vadd.f32 %v811_v41, %v727_v16  ;;  %1022 = vmatmul.f32.gmra.mxu0 %v3039_v22  ;;  %1108 = vmatmul.f32.gmra.mxu1 %v3044_v29 }
 0x179   : > { %1290 = vmatmul.f32.gmra.mxu2 %v1289_v42 }
 0x17a   : > { %v3148_v48 = vadd.f32 %v911_v44, %v812_v46  ;;  %v3661_v49 = vand.u32 4294901760, %v3144_v45 }
 0x17c   : > { %1436 = vmatmul.f32.gmra.mxu3 %v3141_v40  ;;  %v1199_v51 = vpop.trf.xlu0  ;;  %v1296_v52 = vsub.f32 %v3144_v45, %v3661_v49 }
 0x17d   : > { %v1222_v53 = vsel %vm504_vm0, %v1199_v51, 0  ;;  %v592_v54 = vpop.f32.mrf.mxu0  ;;  %v734_v56 = vpop.f32.mrf.mxu1 }
 0x17e   : > { %v3156_v58 = vand.u32 4294901760, %v1222_v53  ;;  %v731_v22 = vadd.f32 %v730_v38, %v592_v54  ;;  %v816_v59 = vpop.f32.mrf.mxu2  ;;  %v1297_v60 = vand.u32 4294901760, %v1296_v52 }
 0x17f   : > { %v917_v61 = vpop.f32.mrf.mxu3 }
 0x180   : > { %v3159_v62 = vsub.f32 %v1222_v53, %v3156_v58  ;;  %v817_v1 = vadd.f32 %v816_v59, %v731_v22  ;;  %1026 = vmatmul.f32.gmra.mxu0 %v3044_v29  ;;  %1112 = vmatmul.f32.gmra.mxu1 %v3049_v36 }
 0x181   : > { %1298 = vmatmul.f32.gmra.mxu2 %v1297_v60 }
 0x182   : > { %v3163_v2 = vadd.f32 %v917_v61, %v817_v1  ;;  %v3659_v3 = vand.u32 4294901760, %v3159_v62 }
 0x184   : > { %1440 = vmatmul.f32.gmra.mxu3 %v3156_v58  ;;  %v1200_v4 = vpop.trf.xlu0  ;;  %v1304_v5 = vsub.f32 %v3159_v62, %v3659_v3 }
 0x185   : > { %v1225_v6 = vsel %vm504_vm0, %v1200_v4, 0  ;;  %v600_v8 = vpop.f32.mrf.mxu0  ;;  %v738_v10 = vpop.f32.mrf.mxu1 }
 0x186   : > { %v3171_v13 = vand.u32 4294901760, %v1225_v6  ;;  %v735_v29 = vadd.f32 %v734_v56, %v600_v8  ;;  %v821_v15 = vpop.f32.mrf.mxu2  ;;  %v1305_v17 = vand.u32 4294901760, %v1304_v5 }
 0x187   : > { %v923_v18 = vpop.f32.mrf.mxu3 }
 0x188   : > { %v3174_v19 = vsub.f32 %v1225_v6, %v3171_v13  ;;  %v822_v21 = vadd.f32 %v821_v15, %v735_v29  ;;  %1030 = vmatmul.f32.gmra.mxu0 %v3049_v36  ;;  %1116 = vmatmul.f32.gmra.mxu1 %v3054_v43 }
 0x189   : > { %1306 = vmatmul.f32.gmra.mxu2 %v1305_v17 }
 0x18a   : > { %v3178_v24 = vadd.f32 %v923_v18, %v822_v21  ;;  %v3657_v25 = vand.u32 4294901760, %v3174_v19 }
 0x18c   : > { %1444 = vmatmul.f32.gmra.mxu3 %v3171_v13  ;;  %v1201_v26 = vpop.trf.xlu0  ;;  %v1312_v28 = vsub.f32 %v3174_v19, %v3657_v25 }
 0x18d   : > { %v1228_v33 = vsel %vm504_vm0, %v1201_v26, 0  ;;  %v608_v34 = vpop.f32.mrf.mxu0  ;;  %v742_v35 = vpop.f32.mrf.mxu1 }
 0x18e   : > { %v3186_v37 = vand.u32 4294901760, %v1228_v33  ;;  %v739_v36 = vadd.f32 %v738_v10, %v608_v34  ;;  %v826_v38 = vpop.f32.mrf.mxu2  ;;  %v1313_v16 = vand.u32 4294901760, %v1312_v28 }
 0x18f   : > { %v929_v41 = vpop.f32.mrf.mxu3 }
 0x190   : > { %v3189_v42 = vsub.f32 %v1228_v33, %v3186_v37  ;;  %v827_v44 = vadd.f32 %v826_v38, %v739_v36  ;;  %1034 = vmatmul.f32.gmra.mxu0 %v3054_v43  ;;  %1120 = vmatmul.f32.gmra.mxu1 %v3059_v50 }
 0x191   : > { %1314 = vmatmul.f32.gmra.mxu2 %v1313_v16 }
 0x192   : > { %v3193_v46 = vadd.f32 %v929_v41, %v827_v44  ;;  %v3656_v51 = vand.u32 4294901760, %v3189_v42 }
 0x194   : > { %1448 = vmatmul.f32.gmra.mxu3 %v3186_v37  ;;  %v1202_v52 = vpop.trf.xlu0  ;;  %v1320_v53 = vsub.f32 %v3189_v42, %v3656_v51 }
 0x195   : > { %v1231_v54 = vsel %vm504_vm0, %v1202_v52, 0  ;;  %v616_v56 = vpop.f32.mrf.mxu0  ;;  %v746_v22 = vpop.f32.mrf.mxu1 }
 0x196   : > { %v3201_v59 = vand.u32 4294901760, %v1231_v54  ;;  %v743_v43 = vadd.f32 %v742_v35, %v616_v56  ;;  %v831_v60 = vpop.f32.mrf.mxu2  ;;  %v1321_v61 = vand.u32 4294901760, %v1320_v53 }
 0x197   : > { %v935_v1 = vpop.f32.mrf.mxu3 }
 0x198   : > { %v3204_v4 = vsub.f32 %v1231_v54, %v3201_v59  ;;  %v832_v5 = vadd.f32 %v831_v60, %v743_v43  ;;  %1038 = vmatmul.f32.gmra.mxu0 %v3059_v50  ;;  %1124 = vmatmul.f32.gmra.mxu1 %v3064_v57 }
 0x199   : > { %1322 = vmatmul.f32.gmra.mxu2 %v1321_v61 }
 0x19a   : > { %v3208_v6 = vadd.f32 %v935_v1, %v832_v5  ;;  %v3654_v8 = vand.u32 4294901760, %v3204_v4 }
 0x19c   : > { %1452 = vmatmul.f32.gmra.mxu3 %v3201_v59  ;;  %v1203_v10 = vpop.trf.xlu0  ;;  %v1328_v29 = vsub.f32 %v3204_v4, %v3654_v8 }
 0x19d   : > { %v1234_v15 = vsel %vm504_vm0, %v1203_v10, 0  ;;  %v624_v17 = vpop.f32.mrf.mxu0  ;;  %v750_v18 = vpop.f32.mrf.mxu1 }
 0x19e   : > { %v3216_v21 = vand.u32 4294901760, %v1234_v15  ;;  %v747_v50 = vadd.f32 %v746_v22, %v624_v17  ;;  %v836_v26 = vpop.f32.mrf.mxu2  ;;  %v1329_v28 = vand.u32 4294901760, %v1328_v29 }
 0x19f   : > { %v941_v33 = vpop.f32.mrf.mxu3 }
 0x1a0   : > { %v3219_v34 = vsub.f32 %v1234_v15, %v3216_v21  ;;  %v837_v35 = vadd.f32 %v836_v26, %v747_v50  ;;  %1042 = vmatmul.f32.gmra.mxu0 %v3064_v57  ;;  %1128 = vmatmul.f32.gmra.mxu1 %v3069_v0 }
 0x1a1   : > { %1330 = vmatmul.f32.gmra.mxu2 %v1329_v28 }
 0x1a2   : > { %v3223_v36 = vadd.f32 %v941_v33, %v837_v35  ;;  %v3653_v38 = vand.u32 4294901760, %v3219_v34 }
 0x1a4   : > { %1456 = vmatmul.f32.gmra.mxu3 %v3216_v21  ;;  %v1204_v16 = vpop.trf.xlu0  ;;  %v1336_v41 = vsub.f32 %v3219_v34, %v3653_v38 }
 0x1a5   : > { %v1237_v44 = vsel %vm504_vm0, %v1204_v16, 0  ;;  %v632_v52 = vpop.f32.mrf.mxu0  ;;  %v754_v53 = vpop.f32.mrf.mxu1 }
 0x1a6   : > { %v3231_v54 = vand.u32 4294901760, %v1237_v44  ;;  %v751_v57 = vadd.f32 %v750_v18, %v632_v52  ;;  %v841_v56 = vpop.f32.mrf.mxu2  ;;  %v1337_v22 = vand.u32 4294901760, %v1336_v41 }
 0x1a7   : > { %v947_v43 = vpop.f32.mrf.mxu3 }
 0x1a8   : > { %v3234_v60 = vsub.f32 %v1237_v44, %v3231_v54  ;;  %v842_v61 = vadd.f32 %v841_v56, %v751_v57  ;;  %1046 = vmatmul.f32.gmra.mxu0 %v3069_v0  ;;  %1132 = vmatmul.f32.gmra.mxu1 %v3074_v7 }
 0x1a9   : > { %1338 = vmatmul.f32.gmra.mxu2 %v1337_v22 }
 0x1aa   : > { %v3651_v1 = vand.u32 4294901760, %v3234_v60  ;;  %v3239_v5 = vadd.f32 %v947_v43, %v842_v61 }
 0x1ac   : > { %1460 = vmatmul.f32.gmra.mxu3 %v3231_v54  ;;  %v1205_v10 = vpop.trf.xlu0  ;;  %v1344_v29 = vsub.f32 %v3234_v60, %v3651_v1 }
 0x1ad   : > { %v1240_v15 = vsel %vm504_vm0, %v1205_v10, 0  ;;  %v640_v17 = vpop.f32.mrf.mxu0  ;;  %v758_v18 = vpop.f32.mrf.mxu1 }
 0x1ae   : > { %v3246_v50 = vand.u32 4294901760, %v1240_v15  ;;  %v755_v0 = vadd.f32 %v754_v53, %v640_v17  ;;  %v846_v26 = vpop.f32.mrf.mxu2  ;;  %v1345_v28 = vand.u32 4294901760, %v1344_v29 }
 0x1af   : > { %v953_v33 = vpop.f32.mrf.mxu3 }
 0x1b0   : > { %v3249_v35 = vsub.f32 %v1240_v15, %v3246_v50  ;;  %v847_v16 = vadd.f32 %v846_v26, %v755_v0  ;;  %1050 = vmatmul.f32.gmra.mxu0 %v3074_v7  ;;  %1136 = vmatmul.f32.gmra.mxu1 %v3079_v14 }
 0x1b1   : > { %1346 = vmatmul.f32.gmra.mxu2 %v1345_v28 }
 0x1b2   : > { %v3650_v41 = vand.u32 4294901760, %v3249_v35  ;;  %v3254_v44 = vadd.f32 %v953_v33, %v847_v16 }
 0x1b4   : > { %1464 = vmatmul.f32.gmra.mxu3 %v3246_v50  ;;  %v1206_v52 = vpop.trf.xlu0  ;;  %v1352_v53 = vsub.f32 %v3249_v35, %v3650_v41 }
 0x1b5   : > { %v1243_v57 = vsel %vm504_vm0, %v1206_v52, 0  ;;  %v648_v56 = vpop.f32.mrf.mxu0  ;;  %v762_v22 = vpop.f32.mrf.mxu1 }
 0x1b6   : > { %v3261_v43 = vand.u32 4294901760, %v1243_v57  ;;  %v759_v7 = vadd.f32 %v758_v18, %v648_v56  ;;  %v851_v61 = vpop.f32.mrf.mxu2  ;;  %v1353_v10 = vand.u32 4294901760, %v1352_v53 }
 0x1b7   : > { %v959_v29 = vpop.f32.mrf.mxu3 }
 0x1b8   : > { %v3264_v15 = vsub.f32 %v1243_v57, %v3261_v43  ;;  %v852_v17 = vadd.f32 %v851_v61, %v759_v7  ;;  %1054 = vmatmul.f32.gmra.mxu0 %v3079_v14  ;;  %1140 = vmatmul.f32.gmra.mxu1 %v3084_v23 }
 0x1b9   : > { %1354 = vmatmul.f32.gmra.mxu2 %v1353_v10 }
 0x1ba   : > { %v3648_v0 = vand.u32 4294901760, %v3264_v15  ;;  %v3269_v26 = vadd.f32 %v959_v29, %v852_v17 }
 0x1bc   : > { %1468 = vmatmul.f32.gmra.mxu3 %v3261_v43  ;;  %v1207_v28 = vpop.trf.xlu0  ;;  %v1360_v18 = vsub.f32 %v3264_v15, %v3648_v0 }
 0x1bd   : > { %v1246_v33 = vsel %vm504_vm0, %v1207_v28, 0  ;;  %v656_v16 = vpop.f32.mrf.mxu0  ;;  %v766_v52 = vpop.f32.mrf.mxu1 }
 0x1be   : > { %v3276_v53 = vand.u32 4294901760, %v1246_v33  ;;  %v763_v14 = vadd.f32 %v762_v22, %v656_v16  ;;  %v856_v57 = vpop.f32.mrf.mxu2  ;;  %v1361_v56 = vand.u32 4294901760, %v1360_v18 }
 0x1bf   : > { %v965_v7 = vpop.f32.mrf.mxu3 }
 0x1c0   : > { %v3279_v61 = vsub.f32 %v1246_v33, %v3276_v53  ;;  %v857_v10 = vadd.f32 %v856_v57, %v763_v14  ;;  %1058 = vmatmul.f32.gmra.mxu0 %v3084_v23  ;;  %1144 = vmatmul.f32.gmra.mxu1 %v3089_v31 }
 0x1c1   : > { %1362 = vmatmul.f32.gmra.mxu2 %v1361_v56 }
 0x1c2   : > { %v3649_v29 = vand.u32 4294901760, %v3279_v61  ;;  %v3284_v17 = vadd.f32 %v965_v7, %v857_v10 }
 0x1c4   : > { %1472 = vmatmul.f32.gmra.mxu3 %v3276_v53  ;;  %v1208_v28 = vpop.trf.xlu0  ;;  %v1368_v22 = vsub.f32 %v3279_v61, %v3649_v29 }
 0x1c5   : > { %v1249_v18 = vsel %vm504_vm0, %v1208_v28, 0  ;;  %v664_v33 = vpop.f32.mrf.mxu0  ;;  %v770_v16 = vpop.f32.mrf.mxu1 }
 0x1c6   : > { %v3291_v14 = vand.u32 4294901760, %v1249_v18  ;;  %v767_v23 = vadd.f32 %v766_v52, %v664_v33  ;;  %v861_v57 = vpop.f32.mrf.mxu2  ;;  %v1369_v56 = vand.u32 4294901760, %v1368_v22 }
 0x1c7   : > { %v971_v0 = vpop.f32.mrf.mxu3 }
 0x1c8   : > { %v3294_v7 = vsub.f32 %v1249_v18, %v3291_v14  ;;  %v862_v10 = vadd.f32 %v861_v57, %v767_v23  ;;  %1062 = vmatmul.f32.gmra.mxu0 %v3089_v31  ;;  %1148 = vmatmul.f32.gmra.mxu1 %v3094_v39 }
 0x1c9   : > { %1370 = vmatmul.f32.gmra.mxu2 %v1369_v56 }
 0x1ca   : > { %v3652_v29 = vand.u32 4294901760, %v3294_v7  ;;  %v3299_v28 = vadd.f32 %v971_v0, %v862_v10 }
 0x1cc   : > { %1476 = vmatmul.f32.gmra.mxu3 %v3291_v14  ;;  %v1209_v41 = vpop.trf.xlu0  ;;  %v1376_v52 = vsub.f32 %v3294_v7, %v3652_v29 }
 0x1cd   : > { %v1252_v22 = vsel %vm504_vm0, %v1209_v41, 0  ;;  %v672_v18 = vpop.f32.mrf.mxu0  ;;  %v774_v33 = vpop.f32.mrf.mxu1 }
 0x1ce   : > { %v3306_v23 = vand.u32 4294901760, %v1252_v22  ;;  %v771_v31 = vadd.f32 %v770_v16, %v672_v18  ;;  %v866_v57 = vpop.f32.mrf.mxu2  ;;  %v1377_v56 = vand.u32 4294901760, %v1376_v52 }
 0x1cf   : > { %v977_v1 = vpop.f32.mrf.mxu3 }
 0x1d0   : > { %v3309_v0 = vsub.f32 %v1252_v22, %v3306_v23  ;;  %v867_v10 = vadd.f32 %v866_v57, %v771_v31  ;;  %1066 = vmatmul.f32.gmra.mxu0 %v3094_v39  ;;  %1152 = vmatmul.f32.gmra.mxu1 %v3099_v47 }
 0x1d1   : > { %1378 = vmatmul.f32.gmra.mxu2 %v1377_v56 }
 0x1d2   : > { %v3655_v29 = vand.u32 4294901760, %v3309_v0  ;;  %v3314_v41 = vadd.f32 %v977_v1, %v867_v10 }
 0x1d4   : > { %1480 = vmatmul.f32.gmra.mxu3 %v3306_v23  ;;  %v1210_v38 = vpop.trf.xlu0  ;;  %v1384_v16 = vsub.f32 %v3309_v0, %v3655_v29 }
 0x1d5   : > { %v1255_v52 = vsel %vm504_vm0, %v1210_v38, 0  ;;  %v680_v22 = vpop.f32.mrf.mxu0  ;;  %v778_v18 = vpop.f32.mrf.mxu1 }
 0x1d6   : > { %v3321_v31 = vand.u32 4294901760, %v1255_v52  ;;  %v775_v39 = vadd.f32 %v774_v33, %v680_v22  ;;  %v871_v57 = vpop.f32.mrf.mxu2  ;;  %v1385_v56 = vand.u32 4294901760, %v1384_v16 }
 0x1d7   : > { %v983_v8 = vpop.f32.mrf.mxu3 }
 0x1d8   : > { %v3324_v1 = vsub.f32 %v1255_v52, %v3321_v31  ;;  %v872_v10 = vadd.f32 %v871_v57, %v775_v39  ;;  %1070 = vmatmul.f32.gmra.mxu0 %v3099_v47  ;;  %1156 = vmatmul.f32.gmra.mxu1 %v3104_v55 }
 0x1d9   : > { %1386 = vmatmul.f32.gmra.mxu2 %v1385_v56 }
 0x1da   : > { %v3658_v29 = vand.u32 4294901760, %v3324_v1  ;;  %v3329_v38 = vadd.f32 %v983_v8, %v872_v10 }
 0x1dc   : > { %1484 = vmatmul.f32.gmra.mxu3 %v3321_v31  ;;  %v1211_v51 = vpop.trf.xlu0  ;;  %v1392_v33 = vsub.f32 %v3324_v1, %v3658_v29 }
 0x1dd   : > { %v1258_v16 = vsel %vm504_vm0, %v1211_v51, 0  ;;  %v688_v52 = vpop.f32.mrf.mxu0  ;;  %v782_v22 = vpop.f32.mrf.mxu1 }
 0x1de   : > { %v3336_v39 = vand.u32 4294901760, %v1258_v16  ;;  %v779_v47 = vadd.f32 %v778_v18, %v688_v52  ;;  %v876_v57 = vpop.f32.mrf.mxu2  ;;  %v1393_v56 = vand.u32 4294901760, %v1392_v33 }
 0x1df   : > { %v989_v25 = vpop.f32.mrf.mxu3 }
 0x1e0   : > { %v3339_v8 = vsub.f32 %v1258_v16, %v3336_v39  ;;  %v877_v10 = vadd.f32 %v876_v57, %v779_v47  ;;  %1074 = vmatmul.f32.gmra.mxu0 %v3104_v55  ;;  %1160 = vmatmul.f32.gmra.mxu1 %v3109_v63 }
 0x1e1   : > { %1394 = vmatmul.f32.gmra.mxu2 %v1393_v56 }
 0x1e2   : > { %v3660_v29 = vand.u32 4294901760, %v3339_v8  ;;  %v3344_v51 = vadd.f32 %v989_v25, %v877_v10 }
 0x1e4   : > { %1488 = vmatmul.f32.gmra.mxu3 %v3336_v39  ;;  %v1400_v18 = vsub.f32 %v3339_v8, %v3660_v29 }
 0x1e5   : > { %v696_v33 = vpop.f32.mrf.mxu0  ;;  %v1101_v52 = vpop.f32.mrf.mxu1 }
 0x1e6   : > { %v783_v16 = vadd.f32 %v782_v22, %v696_v33  ;;  %v1401_v3 = vand.u32 4294901760, %v1400_v18  ;;  %v881_v47 = vpop.f32.mrf.mxu2 }
 0x1e7   : > { %v995_v57 = vpop.f32.mrf.mxu3 }
 0x1e8   : > { %v882_v55 = vadd.f32 %v881_v47, %v783_v16  ;;  %1078 = vmatmul.f32.gmra.mxu0 %v3109_v63  ;;  %1611 = vmatmul.f32.vlgmr.msra.gmra.mxu1 %v1279_v12 }
 0x1e9   : > { %1402 = vmatmul.f32.gmra.mxu2 %v1401_v3 }
 0x1ea   : > { %v3353_v25 = vadd.f32 %v995_v57, %v882_v55 }
 0x1ec   : > { %1807 = vmatmul.f32.vlgmr.msra.gmra.mxu3 %v3114_v9 }
 0x1ed   : > { %v1019_v56 = vpop.f32.mrf.mxu0  ;;  %v1105_v10 = vpop.f32.mrf.mxu1 }
 0x1ee   : > { %v1020_v29 = vadd.f32 %v1019_v56, %v3133_v30 }
 0x1ef   : > { %v1429_v49 = vpop.f32.mrf.mxu3 }
 0x1f0   : > { %v1102_v22 = vadd.f32 %v1101_v52, %v1020_v29  ;;  %1512 = vmatmul.f32.vlgmr.msra.gmra.mxu0 %v3117_v11  ;;  %1617 = vmatmul.f32.gmra.mxu1 %v1287_v32  ;;  %v3680_v11 = vand.u32 4294901760, %v3144_v45 }
 0x1f1   : > { %1725 = vmatmul.f32.vlgmr.msra.gmra.mxu2 %v3114_v9 }
 0x1f2   : > { %1164 = vst [vmem:[#allocation2] sm:$0xff] %v1102_v22 }
 0x1f4   : > { %v1283_v63 = vpop.f32.mrf.mxu2  ;;  %1811 = vmatmul.f32.gmra.mxu3 %v3126_v20 }
 0x1f5   : > { %v3362_v12 = vadd.f32 %v1429_v49, %v1283_v63  ;;  %v1023_v3 = vpop.f32.mrf.mxu0  ;;  %v1109_v18 = vpop.f32.mrf.mxu1 }
 0x1f6   : > { %v1024_v33 = vadd.f32 %v1023_v3, %v3148_v48 }
 0x1f7   : > { %v1433_v30 = vpop.f32.mrf.mxu3 }
 0x1f8   : > { %v1106_v16 = vadd.f32 %v1105_v10, %v1024_v33  ;;  %1517 = vmatmul.f32.gmra.mxu0 %v3129_v27  ;;  %1623 = vmatmul.f32.gmra.mxu1 %v3680_v11  ;;  %v3681_v27 = vand.u32 4294901760, %v3159_v62 }
 0x1f9   : > { %1729 = vmatmul.f32.gmra.mxu2 %v3126_v20 }
 0x1fa   : > { %1165 = vst [vmem:[#allocation2 + $0x8] sm:$0xff] %v1106_v16 }
 0x1fc   : > { %v1291_v9 = vpop.f32.mrf.mxu2  ;;  %1815 = vmatmul.f32.gmra.mxu3 %v3141_v40 }
 0x1fd   : > { %v3370_v32 = vadd.f32 %v1433_v30, %v1291_v9  ;;  %v1027_v49 = vpop.f32.mrf.mxu0  ;;  %v1113_v29 = vpop.f32.mrf.mxu1 }
 0x1fe   : > { %v1028_v52 = vadd.f32 %v1027_v49, %v3163_v2 }
 0x1ff   : > { %v1437_v48 = vpop.f32.mrf.mxu3 }
 0x200   : > { %v1110_v47 = vadd.f32 %v1109_v18, %v1028_v52  ;;  %1522 = vmatmul.f32.gmra.mxu0 %v3144_v45  ;;  %1629 = vmatmul.f32.gmra.mxu1 %v3681_v27  ;;  %v3682_v45 = vand.u32 4294901760, %v3174_v19 }
 0x201   : > { %1733 = vmatmul.f32.gmra.mxu2 %v3141_v40 }
 0x202   : > { %1166 = vst [vmem:[#allocation2 + $0x10] sm:$0xff] %v1110_v47 }
 0x204   : > { %v1299_v20 = vpop.f32.mrf.mxu2  ;;  %1819 = vmatmul.f32.gmra.mxu3 %v3156_v58 }
 0x205   : > { %v3378_v57 = vadd.f32 %v1437_v48, %v1299_v20  ;;  %v1031_v55 = vpop.f32.mrf.mxu0  ;;  %v1117_v56 = vpop.f32.mrf.mxu1 }
 0x206   : > { %v1032_v10 = vadd.f32 %v1031_v55, %v3178_v24 }
 0x207   : > { %v1441_v2 = vpop.f32.mrf.mxu3 }
 0x208   : > { %v1114_v22 = vadd.f32 %v1113_v29, %v1032_v10  ;;  %1527 = vmatmul.f32.gmra.mxu0 %v3159_v62  ;;  %1635 = vmatmul.f32.gmra.mxu1 %v3682_v45  ;;  %v3683_v62 = vand.u32 4294901760, %v3189_v42 }
 0x209   : > { %1737 = vmatmul.f32.gmra.mxu2 %v3156_v58 }
 0x20a   : > { %1167 = vst [vmem:[#allocation2 + $0x18] sm:$0xff] %v1114_v22 }
 0x20c   : > { %v1307_v40 = vpop.f32.mrf.mxu2  ;;  %1823 = vmatmul.f32.gmra.mxu3 %v3171_v13 }
 0x20d   : > { %v3386_v63 = vadd.f32 %v1441_v2, %v1307_v40  ;;  %v1035_v3 = vpop.f32.mrf.mxu0  ;;  %v1121_v18 = vpop.f32.mrf.mxu1 }
 0x20e   : > { %v1036_v33 = vadd.f32 %v1035_v3, %v3193_v46 }
 0x20f   : > { %v1445_v24 = vpop.f32.mrf.mxu3 }
 0x210   : > { %v1118_v30 = vadd.f32 %v1117_v56, %v1036_v33  ;;  %1532 = vmatmul.f32.gmra.mxu0 %v3174_v19  ;;  %1641 = vmatmul.f32.gmra.mxu1 %v3683_v62  ;;  %v3684_v19 = vand.u32 4294901760, %v3204_v4 }
 0x211   : > { %1741 = vmatmul.f32.gmra.mxu2 %v3171_v13 }
 0x212   : > { %1168 = vst [vmem:[#allocation2 + $0x20] sm:$0xff] %v1118_v30 }
 0x214   : > { %v1315_v58 = vpop.f32.mrf.mxu2  ;;  %1827 = vmatmul.f32.gmra.mxu3 %v3186_v37 }
 0x215   : > { %v3394_v16 = vadd.f32 %v1445_v24, %v1315_v58  ;;  %v1039_v11 = vpop.f32.mrf.mxu0  ;;  %v1125_v9 = vpop.f32.mrf.mxu1 }
 0x216   : > { %v1040_v49 = vadd.f32 %v1039_v11, %v3208_v6 }
 0x217   : > { %v1449_v46 = vpop.f32.mrf.mxu3 }
 0x218   : > { %v1122_v29 = vadd.f32 %v1121_v18, %v1040_v49  ;;  %1537 = vmatmul.f32.gmra.mxu0 %v3189_v42  ;;  %1647 = vmatmul.f32.gmra.mxu1 %v3684_v19  ;;  %v3685_v42 = vand.u32 4294901760, %v3219_v34 }
 0x219   : > { %1745 = vmatmul.f32.gmra.mxu2 %v3186_v37 }
 0x21a   : > { %1169 = vst [vmem:[#allocation2 + $0x28] sm:$0xff] %v1122_v29 }
 0x21c   : > { %v1323_v13 = vpop.f32.mrf.mxu2  ;;  %1831 = vmatmul.f32.gmra.mxu3 %v3201_v59 }
 0x21d   : > { %v3402_v52 = vadd.f32 %v1449_v46, %v1323_v13  ;;  %v1043_v48 = vpop.f32.mrf.mxu0  ;;  %v1129_v47 = vpop.f32.mrf.mxu1 }
 0x21e   : > { %v1044_v27 = vadd.f32 %v1043_v48, %v3223_v36 }
 0x21f   : > { %v1453_v6 = vpop.f32.mrf.mxu3 }
 0x220   : > { %v1126_v20 = vadd.f32 %v1125_v9, %v1044_v27  ;;  %1542 = vmatmul.f32.gmra.mxu0 %v3204_v4  ;;  %1653 = vmatmul.f32.gmra.mxu1 %v3685_v42  ;;  %v3686_v4 = vand.u32 4294901760, %v3234_v60 }
 0x221   : > { %1749 = vmatmul.f32.gmra.mxu2 %v3201_v59 }
 0x222   : > { %1170 = vst [vmem:[#allocation2 + $0x30] sm:$0xff] %v1126_v20 }
 0x224   : > { %v1331_v37 = vpop.f32.mrf.mxu2  ;;  %1835 = vmatmul.f32.gmra.mxu3 %v3216_v21 }
 0x225   : > { %v3410_v55 = vadd.f32 %v1453_v6, %v1331_v37  ;;  %v1047_v56 = vpop.f32.mrf.mxu0  ;;  %v1133_v10 = vpop.f32.mrf.mxu1 }
 0x226   : > { %v1048_v2 = vadd.f32 %v1047_v56, %v3239_v5 }
 0x227   : > { %v1457_v36 = vpop.f32.mrf.mxu3 }
 0x228   : > { %v1130_v22 = vadd.f32 %v1129_v47, %v1048_v2  ;;  %1547 = vmatmul.f32.gmra.mxu0 %v3219_v34  ;;  %1659 = vmatmul.f32.gmra.mxu1 %v3686_v4  ;;  %v3687_v34 = vand.u32 4294901760, %v3249_v35 }
 0x229   : > { %1753 = vmatmul.f32.gmra.mxu2 %v3216_v21 }
 0x22a   : > { %1171 = vst [vmem:[#allocation2 + $0x38] sm:$0xff] %v1130_v22 }
 0x22c   : > { %v1339_v59 = vpop.f32.mrf.mxu2  ;;  %1839 = vmatmul.f32.gmra.mxu3 %v3231_v54 }
 0x22d   : > { %v3418_v45 = vadd.f32 %v1457_v36, %v1339_v59  ;;  %v1051_v40 = vpop.f32.mrf.mxu0  ;;  %v1137_v3 = vpop.f32.mrf.mxu1 }
 0x22e   : > { %v1052_v18 = vadd.f32 %v1051_v40, %v3254_v44 }
 0x22f   : > { %v1461_v5 = vpop.f32.mrf.mxu3 }
 0x230   : > { %v1134_v33 = vadd.f32 %v1133_v10, %v1052_v18  ;;  %1552 = vmatmul.f32.gmra.mxu0 %v3234_v60  ;;  %1665 = vmatmul.f32.gmra.mxu1 %v3687_v34  ;;  %v3688_v60 = vand.u32 4294901760, %v3264_v15 }
 0x231   : > { %1757 = vmatmul.f32.gmra.mxu2 %v3231_v54 }
 0x232   : > { %1172 = vst [vmem:[#allocation2 + $0x40] sm:$0xff] %v1134_v33 }
 0x234   : > { %v1347_v21 = vpop.f32.mrf.mxu2  ;;  %1843 = vmatmul.f32.gmra.mxu3 %v3246_v50 }
 0x235   : > { %v3426_v24 = vadd.f32 %v1461_v5, %v1347_v21  ;;  %v1055_v30 = vpop.f32.mrf.mxu0  ;;  %v1141_v62 = vpop.f32.mrf.mxu1 }
 0x236   : > { %v1056_v58 = vadd.f32 %v1055_v30, %v3269_v26 }
 0x237   : > { %v1465_v44 = vpop.f32.mrf.mxu3 }
 0x238   : > { %v1138_v11 = vadd.f32 %v1137_v3, %v1056_v58  ;;  %1557 = vmatmul.f32.gmra.mxu0 %v3249_v35  ;;  %1671 = vmatmul.f32.gmra.mxu1 %v3688_v60  ;;  %v3689_v35 = vand.u32 4294901760, %v3279_v61 }
 0x239   : > { %1761 = vmatmul.f32.gmra.mxu2 %v3246_v50 }
 0x23a   : > { %1173 = vst [vmem:[#allocation2 + $0x48] sm:$0xff] %v1138_v11 }
 0x23c   : > { %v1355_v54 = vpop.f32.mrf.mxu2  ;;  %1847 = vmatmul.f32.gmra.mxu3 %v3261_v43 }
 0x23d   : > { %v3434_v9 = vadd.f32 %v1465_v44, %v1355_v54  ;;  %v1059_v49 = vpop.f32.mrf.mxu0  ;;  %v1145_v46 = vpop.f32.mrf.mxu1 }
 0x23e   : > { %v1060_v29 = vadd.f32 %v1059_v49, %v3284_v17 }
 0x23f   : > { %v1469_v26 = vpop.f32.mrf.mxu3 }
 0x240   : > { %v1142_v19 = vadd.f32 %v1141_v62, %v1060_v29  ;;  %1562 = vmatmul.f32.gmra.mxu0 %v3264_v15  ;;  %1677 = vmatmul.f32.gmra.mxu1 %v3689_v35  ;;  %v3690_v15 = vand.u32 4294901760, %v3294_v7 }
 0x241   : > { %1765 = vmatmul.f32.gmra.mxu2 %v3261_v43 }
 0x242   : > { %1174 = vst [vmem:[#allocation2 + $0x50] sm:$0xff] %v1142_v19 }
 0x244   : > { %v1363_v50 = vpop.f32.mrf.mxu2  ;;  %1851 = vmatmul.f32.gmra.mxu3 %v3276_v53 }
 0x245   : > { %v3442_v13 = vadd.f32 %v1469_v26, %v1363_v50  ;;  %v1063_v48 = vpop.f32.mrf.mxu0  ;;  %v1149_v47 = vpop.f32.mrf.mxu1 }
 0x246   : > { %v1064_v27 = vadd.f32 %v1063_v48, %v3299_v28 }
 0x247   : > { %v1473_v17 = vpop.f32.mrf.mxu3 }
 0x248   : > { %v1146_v6 = vadd.f32 %v1145_v46, %v1064_v27  ;;  %1567 = vmatmul.f32.gmra.mxu0 %v3279_v61  ;;  %1683 = vmatmul.f32.gmra.mxu1 %v3690_v15  ;;  %v3691_v61 = vand.u32 4294901760, %v3309_v0 }
 0x249   : > { %1769 = vmatmul.f32.gmra.mxu2 %v3276_v53 }
 0x24a   : > { %1175 = vst [vmem:[#allocation2 + $0x58] sm:$0xff] %v1146_v6 }
 0x24c   : > { %v1371_v43 = vpop.f32.mrf.mxu2  ;;  %1855 = vmatmul.f32.gmra.mxu3 %v3291_v14 }
 0x24d   : > { %v3450_v20 = vadd.f32 %v1473_v17, %v1371_v43  ;;  %v1067_v42 = vpop.f32.mrf.mxu0  ;;  %v1153_v37 = vpop.f32.mrf.mxu1 }
 0x24e   : > { %v1068_v56 = vadd.f32 %v1067_v42, %v3314_v41 }
 0x24f   : > { %v1477_v28 = vpop.f32.mrf.mxu3 }
 0x250   : > { %v1150_v10 = vadd.f32 %v1149_v47, %v1068_v56  ;;  %1572 = vmatmul.f32.gmra.mxu0 %v3294_v7  ;;  %1689 = vmatmul.f32.gmra.mxu1 %v3691_v61  ;;  %v3692_v7 = vand.u32 4294901760, %v3324_v1 }
 0x251   : > { %1773 = vmatmul.f32.gmra.mxu2 %v3291_v14 }
 0x252   : > { %1176 = vst [vmem:[#allocation2 + $0x60] sm:$0xff] %v1150_v10 }
 0x254   : > { %v1379_v53 = vpop.f32.mrf.mxu2  ;;  %1859 = vmatmul.f32.gmra.mxu3 %v3306_v23 }
 0x255   : > { %v3458_v2 = vadd.f32 %v1477_v28, %v1379_v53  ;;  %v1071_v36 = vpop.f32.mrf.mxu0  ;;  %v1157_v22 = vpop.f32.mrf.mxu1 }
 0x256   : > { %v1072_v4 = vadd.f32 %v1071_v36, %v3329_v38 }
 0x257   : > { %v1481_v41 = vpop.f32.mrf.mxu3 }
 0x258   : > { %v1154_v59 = vadd.f32 %v1153_v37, %v1072_v4  ;;  %1577 = vmatmul.f32.gmra.mxu0 %v3309_v0  ;;  %1695 = vmatmul.f32.gmra.mxu1 %v3692_v7  ;;  %v3693_v0 = vand.u32 4294901760, %v3339_v8 }
 0x259   : > { %1777 = vmatmul.f32.gmra.mxu2 %v3306_v23 }
 0x25a   : > { %1177 = vst [vmem:[#allocation2 + $0x68] sm:$0xff] %v1154_v59 }
 0x25c   : > { %v1387_v14 = vpop.f32.mrf.mxu2  ;;  %1863 = vmatmul.f32.gmra.mxu3 %v3321_v31 }
 0x25d   : > { %v3466_v40 = vadd.f32 %v1481_v41, %v1387_v14  ;;  %v1075_v3 = vpop.f32.mrf.mxu0  ;;  %v1161_v18 = vpop.f32.mrf.mxu1 }
 0x25e   : > { %v1076_v5 = vadd.f32 %v1075_v3, %v3344_v51 }
 0x25f   : > { %v1485_v38 = vpop.f32.mrf.mxu3 }
 0x260   : > { %v1158_v33 = vadd.f32 %v1157_v22, %v1076_v5  ;;  %1582 = vmatmul.f32.gmra.mxu0 %v3324_v1  ;;  %1701 = vmatmul.f32.gmra.mxu1 %v3693_v0 }
 0x261   : > { %1781 = vmatmul.f32.gmra.mxu2 %v3321_v31 }
 0x262   : > { %1178 = vst [vmem:[#allocation2 + $0x70] sm:$0xff] %v1158_v33 }
 0x264   : > { %v1395_v23 = vpop.f32.mrf.mxu2  ;;  %1867 = vmatmul.f32.gmra.mxu3 %v3336_v39 }
 0x265   : > { %v3474_v34 = vadd.f32 %v1485_v38, %v1395_v23  ;;  %v1079_v21 = vpop.f32.mrf.mxu0  ;;  %v1612_v30 = vpop.f32.mrf.mxu1 }
 0x266   : > { %v1080_v62 = vadd.f32 %v1079_v21, %v3353_v25 }
 0x267   : > { %v1489_v51 = vpop.f32.mrf.mxu3 }
 0x268   : > { %v1162_v58 = vadd.f32 %v1161_v18, %v1080_v62  ;;  %1587 = vmatmul.f32.gmra.mxu0 %v3339_v8 }
 0x269   : > { %1785 = vmatmul.f32.gmra.mxu2 %v3336_v39 }
 0x26a   : > { %1179 = vst [vmem:[#allocation2 + $0x78] sm:$0xff] %v1162_v58 }
 0x26c   : > { %v1403_v1 = vpop.f32.mrf.mxu2 }
 0x26d   : > { %v3479_v44 = vadd.f32 %v1489_v51, %v1403_v1  ;;  %v1513_v31 = vpop.f32.mrf.mxu0  ;;  %v1618_v11 = vpop.f32.mrf.mxu1 }
 0x26e   : > { %v1514_v60 = vadd.f32 %v1513_v31, %v3362_v12 }
 0x26f   : > { %v1808_v54 = vpop.f32.mrf.mxu3 }
 0x270   : > { %v1613_v49 = vadd.f32 %v1612_v30, %v1514_v60 }
 0x274   : > { %v1726_v46 = vpop.f32.mrf.mxu2 }
 0x275   : > { %v1727_v29 = vadd.f32 %v1726_v46, %v1613_v49  ;;  %v1518_v26 = vpop.f32.mrf.mxu0  ;;  %v1624_v25 = vpop.f32.mrf.mxu1 }
 0x276   : > { %v1519_v35 = vadd.f32 %v1518_v26, %v3370_v32 }
 0x277   : > { %v1809_v19 = vadd.f32 %v1808_v54, %v1727_v29  ;;  %v1812_v8 = vpop.f32.mrf.mxu3 }
 0x278   : > { %v1619_v39 = vadd.f32 %v1618_v11, %v1519_v35 }
 0x279   : > { %1871 = vst [vmem:[#allocation3] sm:$0xff] %v1809_v19 }
 0x27c   : > { %v1730_v50 = vpop.f32.mrf.mxu2 }
 0x27d   : > { %v1731_v48 = vadd.f32 %v1730_v50, %v1619_v39  ;;  %v1523_v47 = vpop.f32.mrf.mxu0  ;;  %v1630_v27 = vpop.f32.mrf.mxu1 }
 0x27e   : > { %v1524_v6 = vadd.f32 %v1523_v47, %v3378_v57 }
 0x27f   : > { %v1813_v17 = vadd.f32 %v1812_v8, %v1731_v48  ;;  %v1816_v12 = vpop.f32.mrf.mxu3 }
 0x280   : > { %v1625_v15 = vadd.f32 %v1624_v25, %v1524_v6 }
 0x281   : > { %1872 = vst [vmem:[#allocation3 + $0x8] sm:$0xff] %v1813_v17 }
 0x284   : > { %v1734_v43 = vpop.f32.mrf.mxu2 }
 0x285   : > { %v1735_v42 = vadd.f32 %v1734_v43, %v1625_v15  ;;  %v1528_v37 = vpop.f32.mrf.mxu0  ;;  %v1636_v56 = vpop.f32.mrf.mxu1 }
 0x286   : > { %v1529_v32 = vadd.f32 %v1528_v37, %v3386_v63 }
 0x287   : > { %v1817_v28 = vadd.f32 %v1816_v12, %v1735_v42  ;;  %v1820_v10 = vpop.f32.mrf.mxu3 }
 0x288   : > { %v1631_v61 = vadd.f32 %v1630_v27, %v1529_v32 }
 0x289   : > { %1873 = vst [vmem:[#allocation3 + $0x10] sm:$0xff] %v1817_v28 }
 0x28c   : > { %v1738_v53 = vpop.f32.mrf.mxu2 }
 0x28d   : > { %v1739_v36 = vadd.f32 %v1738_v53, %v1631_v61  ;;  %v1533_v22 = vpop.f32.mrf.mxu0  ;;  %v1642_v4 = vpop.f32.mrf.mxu1 }
 0x28e   : > { %v1534_v57 = vadd.f32 %v1533_v22, %v3394_v16 }
 0x28f   : > { %v1821_v41 = vadd.f32 %v1820_v10, %v1739_v36  ;;  %v1824_v59 = vpop.f32.mrf.mxu3 }
 0x290   : > { %v1637_v7 = vadd.f32 %v1636_v56, %v1534_v57 }
 0x291   : > { %1874 = vst [vmem:[#allocation3 + $0x18] sm:$0xff] %v1821_v41 }
 0x294   : > { %v1742_v14 = vpop.f32.mrf.mxu2 }
 0x295   : > { %v1743_v3 = vadd.f32 %v1742_v14, %v1637_v7  ;;  %v1538_v18 = vpop.f32.mrf.mxu0  ;;  %v1648_v5 = vpop.f32.mrf.mxu1 }
 0x296   : > { %v1539_v63 = vadd.f32 %v1538_v18, %v3402_v52  ;;  %v1887_v18 = vlaneseq }
 0x297   : > { %v1825_v38 = vadd.f32 %v1824_v59, %v1743_v3  ;;  %v1828_v33 = vpop.f32.mrf.mxu3 }
 0x298   : > { %v1643_v0 = vadd.f32 %v1642_v4, %v1539_v63 }
 0x299   : > { %1875 = vst [vmem:[#allocation3 + $0x20] sm:$0xff] %v1825_v38  ;;  %v3494_v38 = vshrl.u32 %v1887_v18, 7 }
 0x29c   : > { %v1746_v23 = vpop.f32.mrf.mxu2 }
 0x29d   : > { %v1747_v21 = vadd.f32 %v1746_v23, %v1643_v0  ;;  %v1543_v30 = vpop.f32.mrf.mxu0  ;;  %v1654_v62 = vpop.f32.mrf.mxu1 }
 0x29e   : > { %v1544_v16 = vadd.f32 %v1543_v30, %v3410_v55 }
 0x29f   : > { %v1829_v51 = vadd.f32 %v1828_v33, %v1747_v21  ;;  %v1832_v58 = vpop.f32.mrf.mxu3 }
 0x2a0   : > { %v1649_v1 = vadd.f32 %v1648_v5, %v1544_v16 }
 0x2a1   : > { %1876 = vst [vmem:[#allocation3 + $0x28] sm:$0xff] %v1829_v51 }
 0x2a4   : > { %v1750_v31 = vpop.f32.mrf.mxu2 }
 0x2a5   : > { %v1751_v11 = vadd.f32 %v1750_v31, %v1649_v1  ;;  %v1548_v60 = vpop.f32.mrf.mxu0  ;;  %v1660_v54 = vpop.f32.mrf.mxu1 }
 0x2a6   : > { %v1549_v52 = vadd.f32 %v1548_v60, %v3418_v45 }
 0x2a7   : > { %v1833_v49 = vadd.f32 %v1832_v58, %v1751_v11  ;;  %v1836_v46 = vpop.f32.mrf.mxu3 }
 0x2a8   : > { %v1655_v29 = vadd.f32 %v1654_v62, %v1549_v52 }
 0x2a9   : > { %1877 = vst [vmem:[#allocation3 + $0x30] sm:$0xff] %v1833_v49 }
 0x2ac   : > { %v1754_v26 = vpop.f32.mrf.mxu2 }
 0x2ad   : > { %v1755_v25 = vadd.f32 %v1754_v26, %v1655_v29  ;;  %v1553_v19 = vpop.f32.mrf.mxu0  ;;  %v1666_v35 = vpop.f32.mrf.mxu1 }
 0x2ae   : > { %v1554_v55 = vadd.f32 %v1553_v19, %v3426_v24 }
 0x2af   : > { %v1837_v8 = vadd.f32 %v1836_v46, %v1755_v25  ;;  %v1840_v39 = vpop.f32.mrf.mxu3 }
 0x2b0   : > { %v1661_v50 = vadd.f32 %v1660_v54, %v1554_v55  ;;  %v2818_v55 = vmov 0  }
 0x2b1   : > { %1878 = vst [vmem:[#allocation3 + $0x38] sm:$0xff] %v1837_v8 }
 0x2b4   : > { %v1758_v48 = vpop.f32.mrf.mxu2 }
 0x2b5   : > { %v1759_v47 = vadd.f32 %v1758_v48, %v1661_v50  ;;  %v1558_v27 = vpop.f32.mrf.mxu0  ;;  %v1672_v12 = vpop.f32.mrf.mxu1 }
 0x2b6   : > { %v1559_v6 = vadd.f32 %v1558_v27, %v3434_v9 }
 0x2b7   : > { %v1841_v17 = vadd.f32 %v1840_v39, %v1759_v47  ;;  %v1844_v45 = vpop.f32.mrf.mxu3  ;;  %v2822_v39 = vmov 3e+38  }
 0x2b8   : > { %v1667_v15 = vadd.f32 %v1666_v35, %v1559_v6 }
 0x2b9   : > { %1879 = vst [vmem:[#allocation3 + $0x40] sm:$0xff] %v1841_v17 }
 0x2bc   : > { %v1762_v43 = vpop.f32.mrf.mxu2 }
 0x2bd   : > { %v1763_v42 = vadd.f32 %v1762_v43, %v1667_v15  ;;  %v1563_v37 = vpop.f32.mrf.mxu0  ;;  %v1678_v32 = vpop.f32.mrf.mxu1 }
 0x2be   : > { %v1564_v28 = vadd.f32 %v1563_v37, %v3442_v13 }
 0x2bf   : > { %v1845_v56 = vadd.f32 %v1844_v45, %v1763_v42  ;;  %v1848_v24 = vpop.f32.mrf.mxu3 }
 0x2c0   : > { %v1673_v10 = vadd.f32 %v1672_v12, %v1564_v28 }
 0x2c1   : > { %1880 = vst [vmem:[#allocation3 + $0x48] sm:$0xff] %v1845_v56 }
 0x2c4   : > { %v1766_v61 = vpop.f32.mrf.mxu2 }
 0x2c5   : > { %v1767_v53 = vadd.f32 %v1766_v61, %v1673_v10  ;;  %v1568_v36 = vpop.f32.mrf.mxu0  ;;  %v1684_v57 = vpop.f32.mrf.mxu1 }
 0x2c6   : > { %v1569_v9 = vadd.f32 %v1568_v36, %v3450_v20 }
 0x2c7   : > { %v1849_v22 = vadd.f32 %v1848_v24, %v1767_v53  ;;  %v1852_v4 = vpop.f32.mrf.mxu3 }
 0x2c8   : > { %v1679_v41 = vadd.f32 %v1678_v32, %v1569_v9 }
 0x2c9   : > { %1881 = vst [vmem:[#allocation3 + $0x50] sm:$0xff] %v1849_v22 }
 0x2cc   : > { %v1770_v59 = vpop.f32.mrf.mxu2 }
 0x2cd   : > { %v1771_v7 = vadd.f32 %v1770_v59, %v1679_v41  ;;  %v1573_v14 = vpop.f32.mrf.mxu0  ;;  %v1690_v20 = vpop.f32.mrf.mxu1 }
 0x2ce   : > { %v1574_v13 = vadd.f32 %v1573_v14, %v3458_v2 }
 0x2cf   : > { %v1853_v3 = vadd.f32 %v1852_v4, %v1771_v7  ;;  %v1856_v5 = vpop.f32.mrf.mxu3 }
 0x2d0   : > { %v1685_v63 = vadd.f32 %v1684_v57, %v1574_v13 }
 0x2d1   : > { %1882 = vst [vmem:[#allocation3 + $0x58] sm:$0xff] %v1853_v3 }
 0x2d4   : > { %v1774_v33 = vpop.f32.mrf.mxu2 }
 0x2d5   : > { %v1775_v0 = vadd.f32 %v1774_v33, %v1685_v63  ;;  %v1578_v23 = vpop.f32.mrf.mxu0  ;;  %v1696_v11 = vpop.f32.mrf.mxu1 }
 0x2d6   : > { %v1579_v30 = vadd.f32 %v1578_v23, %v3466_v40 }
 0x2d7   : > { %v1857_v21 = vadd.f32 %v1856_v5, %v1775_v0  ;;  %v1860_v62 = vpop.f32.mrf.mxu3 }
 0x2d8   : > { %v1691_v51 = vadd.f32 %v1690_v20, %v1579_v30 }
 0x2d9   : > { %1883 = vst [vmem:[#allocation3 + $0x60] sm:$0xff] %v1857_v21 }
 0x2dc   : > { %v1778_v16 = vpop.f32.mrf.mxu2 }
 0x2dd   : > { %v1779_v58 = vadd.f32 %v1778_v16, %v1691_v51  ;;  %v1583_v1 = vpop.f32.mrf.mxu0  ;;  %v1702_v26 = vpop.f32.mrf.mxu1 }
 0x2de   : > { %v1584_v31 = vadd.f32 %v1583_v1, %v3474_v34 }
 0x2df   : > { %v1861_v2 = vadd.f32 %v1860_v62, %v1779_v58  ;;  %v1864_v54 = vpop.f32.mrf.mxu3 }
 0x2e0   : > { %v1697_v60 = vadd.f32 %v1696_v11, %v1584_v31 }
 0x2e1   : > { %1884 = vst [vmem:[#allocation3 + $0x68] sm:$0xff] %v1861_v2 }
 0x2e4   : > { %v1782_v49 = vpop.f32.mrf.mxu2 }
 0x2e5   : > { %v1783_v52 = vadd.f32 %v1782_v49, %v1697_v60  ;;  %v1588_v40 = vpop.f32.mrf.mxu0 }
 0x2e6   : > { %v1589_v29 = vadd.f32 %v1588_v40, %v3479_v44 }
 0x2e7   : > { %v1865_v46 = vadd.f32 %v1864_v54, %v1783_v52  ;;  %v1868_v34 = vpop.f32.mrf.mxu3 }
 0x2e8   : > { %v1703_v25 = vadd.f32 %v1702_v26, %v1589_v29 }
 0x2e9   : > { %1885 = vst [vmem:[#allocation3 + $0x70] sm:$0xff] %v1865_v46 }
 0x2ec   : > { %v1786_v19 = vpop.f32.mrf.mxu2 }
 0x2ed   : > { %v1787_v35 = vadd.f32 %v1786_v19, %v1703_v25 }
 0x2ef   : > { %v1869_v8 = vadd.f32 %v1868_v34, %v1787_v35 }
 0x2f1   : > { %1886 = vst [vmem:[#allocation3 + $0x78] sm:$0xff] %v1869_v8 }
 0x2f2 LB: >> { %s2345_s21 = sshll.u32 %s2828_s9, 3  ;;  %v1902_v44 = vstv %s2828_s9  ;;  %s1894_s9 = sadd.s32 1, %s2828_s9   ;;  %s2828_s9 = sphi %s2826_s9, %s1894_s9   ;;  %v2824_v39 = vphi %v2822_v39, %v2823_v39   ;;  %v2820_v55 = vphi %v2818_v55, %v2819_v55  }
 0x2f3   : >> { %s1898_s12 = scalar_lea.vmem [#allocation2], %s2345_s21  ;;  %p1891_p4 = scmp.ge.s32.totalorder %s1894_s9, 16  }
 0x2f4   : >> { %v1899_v50 = vld [vmem:[%s1898_s12] sm:$0xff]  ;;  %v2830_v53 = vmov (%p1891_p4), 0   ;;  %v2834_v36 = vmov (%p1891_p4), 3e+38   ;;  %s2838_s22 = smov (%p1891_p4), 0  }
 0x2f5   : >> { %vm1900_vm1 = vcmp.lt.f32.partialorder %v1899_v50, %v2824_v39  ;;  %1893 = sbr.rel (!%p1891_p4) target bundleno = 754 (0x2f2), region = 205 }
 0x2f6   : >> { %v1901_v48 = vsel %vm1900_vm1, %v1899_v50, %v2824_v39   ;;  %v1903_v47 = vsel %vm1900_vm1, %v1902_v44, %v2820_v55  }
 0x2f7   : >> { %v2819_v55 = vmov %v1903_v47   ;;  %v2823_v39 = vmov %v1901_v48   ;;  %v1906_v27 = vrot.slane (%p1891_p4), %v1901_v48, 4  ;;  %v1904_v45 = vmul.u32 (%p1891_p4), 8, %v1903_v47 }
 0x2f9   : > { %v1907_v17 = vmin.f32 (%p1891_p4), %v1901_v48, %v1906_v27  ;;  %v1905_v43 = vadd.s32 (%p1891_p4), %v1904_v45, %v3494_v38 }
 0x2fb   : > { %v1908_v6 = vrot.slane %v1907_v17, 2 }
 0x2fd   : > { %v1909_v12 = vmin.f32 %v1907_v17, %v1908_v6 }
 0x2ff   : > { %v1910_v15 = vrot.slane %v1909_v12, 1 }
 0x301   : > { %v1911_v42 = vmin.f32 %v1909_v12, %v1910_v15 }
 0x303   : > { %vm1912_vm2 = vcmp.eq.f32.partialorder %v1901_v48, %v1911_v42 }
 0x304   : > { %v1913_v37 = vsel %vm1912_vm2, %v1905_v43, 1073741824 }
 0x305   : > { %v1914_v56 = vrot.slane %v1913_v37, 4 }
 0x307   : > { %vm1915_vm3 = vcmp.lt.s32.totalorder %v1913_v37, %v1914_v56 }
 0x308   : > { %v1916_v28 = vsel %vm1915_vm3, %v1913_v37, %v1914_v56 }
 0x309   : > { %v1917_v24 = vrot.slane %v1916_v28, 2 }
 0x30b   : > { %vm1918_vm4 = vcmp.lt.s32.totalorder %v1916_v28, %v1917_v24 }
 0x30c   : > { %v1919_v32 = vsel %vm1918_vm4, %v1916_v28, %v1917_v24 }
 0x30d   : > { %v1920_v10 = vrot.slane %v1919_v32, 1 }
 0x30f   : > { %vm1921_vm5 = vcmp.lt.s32.totalorder %v1919_v32, %v1920_v10 }
 0x310   : > { %v1922_v61 = vsel %vm1921_vm5, %v1919_v32, %v1920_v10 }
 0x311 LB: >> { %s2346_s23 = sshll.u32 %s2840_s22, 3  ;;  %v1936_v22 = vstv %s2840_s22  ;;  %s1928_s22 = sadd.s32 1, %s2840_s22   ;;  %s2840_s22 = sphi %s2838_s22, %s1928_s22   ;;  %v2836_v36 = vphi %v2834_v36, %v2835_v36   ;;  %v2832_v53 = vphi %v2830_v53, %v2831_v53  }
 0x312   : >> { %s1932_s1 = scalar_lea.vmem [#allocation3], %s2346_s23  ;;  %p1925_p5 = scmp.ge.s32.totalorder %s1928_s22, 16  }
 0x313   : >> { %v1933_v9 = vld [vmem:[%s1932_s1] sm:$0xff]  ;;  %v1958_v59 = vmax.f32 (%p1925_p5), %v1911_v42, 0.0  ;;  %1988 = vst [vmem:[%s462_s8] sm:$0x1] (%p1925_p5), %v1922_v61  ;;  %s2024_s29 = scalar_lea.hbm (%p1925_p5), %s3635_s4, %s2808_s27  ;;  %s3514_s16 = sshll.u32 (%p1925_p5), %s444_s13, 4  ;;  %s2027_s16 = int_to_ptr.vmem [resolvable:$true] %s3514_s16 }
 0x314   : >> { %vm1934_vm6 = vcmp.lt.f32.partialorder %v1933_v9, %v2836_v36  ;;  %1927 = sbr.rel (!%p1925_p5) target bundleno = 785 (0x311), region = 216  ;;  %s3516_s0 = sshll.u32 (%p1925_p5), %s2024_s29, 4  ;;  %s2029_s0 = int_to_ptr.hbm [resolvable:$true] %s3516_s0 }
 0x315   : >> { %v1935_v4 = vsel %vm1934_vm6, %v1933_v9, %v2836_v36   ;;  %v1937_v41 = vsel %vm1934_vm6, %v1936_v22, %v2832_v53   ;;  %1986 = vst [vmem:[%s456_s11] sm:$0x1] (%p1925_p5), %v1958_v59  ;;  %s2064_s17 = scalar_lea.hbm (%p1925_p5), %s3638_s7, %s2808_s27  ;;  %s2066_s18 = sshll.u32 (%p1925_p5), %s462_s8, 4  ;;  %s2067_s18 = int_to_ptr.vmem [resolvable:$true] %s2066_s18 }
 0x316   : >> { %v2831_v53 = vmov %v1937_v41   ;;  %v2835_v36 = vmov %v1935_v4   ;;  %v1940_v57 = vrot.slane (%p1925_p5), %v1935_v4, 4  ;;  %v1938_v3 = vmul.u32 (%p1925_p5), 8, %v1937_v41  ;;  %s2068_s19 = sshll.u32 (%p1925_p5), %s2064_s17, 4  ;;  %s2015_s9 = scalar_lea.sflag (%p1925_p5), [#allocation17], %s3007_s26  ;;  %s2069_s19 = int_to_ptr.hbm [resolvable:$true] %s2068_s19 }
 0x317   : > { %s2624_s21 = sshra.s32 (%p1925_p5), %s2069_s19, 4  ;;  %s2630_s1 = scalar_lea.hbm (%p1925_p5), %s3638_s7, 2  ;;  %s2625_s21 = int_to_ptr.hbm [resolvable:$true] %s2624_s21 }
 0x318   : > { %v1941_v7 = vmin.f32 (%p1925_p5), %v1935_v4, %v1940_v57  ;;  %v1939_v5 = vadd.s32 (%p1925_p5), %v1938_v3, %v3494_v38  ;;  %s2626_s12 = scalar_lea.hbm (%p1925_p5), %s2625_s21, 1  ;;  %p2631_p10 = scmp.lt.s32.totalorder (%p1925_p5), %s2625_s21, %s3638_s7 }
 0x319   : > { %p2627_p6 = scmp.ne.s32.totalorder %s2625_s21, %s2626_s12  ;;  %p2632_p13 = scmp.lt.s32.totalorder %s2630_s1, %s2626_s12 }
 0x31a   : > { %v1942_v14 = vrot.slane %v1941_v7, 2 }
 0x31b   : > { %p2628_p7 = pnand %p2627_p6, %p2937_p9  ;;  %p2633_p0 = por %p2632_p13, %p2631_p10 }
 0x31c   : > { %v1943_v13 = vmin.f32 %v1941_v7, %v1942_v14 }
 0x31d   : > { %p2629_p8 = pneg %p2628_p7 }
 0x31e   : > { %v1944_v18 = vrot.slane %v1943_v13, 1 }
 0x31f   : > { %p2634_p1 = pnand %p2633_p0, %p2629_p8 }
 0x320   : > { %v1945_v63 = vmin.f32 %v1943_v13, %v1944_v18 }
 0x322   : > { %vm1946_vm7 = vcmp.eq.f32.partialorder %v1935_v4, %v1945_v63  ;;  %v1957_v33 = vmax.f32 %v1945_v63, 0.0 }
 0x323   : > { %2637 = shalt.err (!%p2634_p1)
}
 0x324   : > { %2360 = dma.vmem_to_hbm [thread:$0]  (%p2937_p9), %s2067_s18, 16, %s2069_s19, %s2015_s9   ;;  %v1947_v38 = vsel %vm1946_vm7, %v1939_v5, 1073741824  ;;  %1968 = vst [vmem:[%s444_s13] sm:$0x1] %v1957_v33 }
 0x325   : > { %v1948_v0 = vrot.slane %v1947_v38, 4  ;;  %s2003_s15 = scalar_lea.sflag [#allocation6], %s3007_s26  ;;  %s2652_s29 = sshra.s32 %s2029_s0, 4  ;;  %s2653_s29 = int_to_ptr.hbm [resolvable:$true] %s2652_s29 }
 0x326   : > { %s2654_s24 = scalar_lea.hbm %s2653_s29, 1  ;;  %s2658_s21 = scalar_lea.hbm %s3635_s4, 2 }
 0x327   : > { %p2655_p2 = scmp.ne.s32.totalorder %s2653_s29, %s2654_s24  ;;  %p2659_p5 = scmp.lt.s32.totalorder %s2653_s29, %s3635_s4 }
 0x328   : > { %p2660_p6 = scmp.lt.s32.totalorder %s2658_s21, %s2654_s24 }
 0x329   : > { %p2656_p3 = pnand %p2655_p2, %p2937_p9 }
 0x32a   : > { %p2661_p7 = por %p2660_p6, %p2659_p5 }
 0x32b   : > { %p2657_p4 = pneg %p2656_p3 }
 0x32d   : > { %p2662_p8 = pnand %p2661_p7, %p2657_p4 }
 0x32f   : > { %2665 = shalt.err (!%p2662_p8)
}
 0x330   : > { %2357 = dma.vmem_to_hbm [thread:$0]  (%p2937_p9), %s2027_s16, 16, %s2029_s0, %s2003_s15   ;;  %vm1949_vm8 = vcmp.lt.s32.totalorder %v1947_v38, %v1948_v0 }
 0x331   : > { %v1950_v23 = vsel %vm1949_vm8, %v1947_v38, %v1948_v0  ;;  %s2038_s9 = scalar_lea.hbm %s3636_s5, %s2808_s27  ;;  %s3694_s1 = sld [smem:[#allocation33_spill]] }
 0x332   : > { %v1951_v20 = vrot.slane %v1950_v23, 2  ;;  %s2040_s10 = sshll.u32 %s450_s20, 4  ;;  %s2042_s29 = sshll.u32 %s2038_s9, 4  ;;  %s2041_s10 = int_to_ptr.vmem [resolvable:$true] %s2040_s10  ;;  %s2043_s29 = int_to_ptr.hbm [resolvable:$true] %s2042_s29 }
 0x333   : > { %s3570_s16 = sshll.u32 %s456_s11, 4  ;;  %s2680_s15 = sshra.s32 %s2043_s29, 4  ;;  %s2054_s16 = int_to_ptr.vmem [resolvable:$true] %s3570_s16  ;;  %s2681_s15 = int_to_ptr.hbm [resolvable:$true] %s2680_s15 }
 0x334   : > { %vm1952_vm9 = vcmp.lt.s32.totalorder %v1950_v23, %v1951_v20  ;;  %s2682_s24 = scalar_lea.hbm %s2681_s15, 1  ;;  %s2686_s17 = scalar_lea.hbm %s3636_s5, 2 }
 0x335   : > { %v1953_v21 = vsel %vm1952_vm9, %v1950_v23, %v1951_v20  ;;  %p2683_p10 = scmp.ne.s32.totalorder %s2681_s15, %s2682_s24  ;;  %p2687_p1 = scmp.lt.s32.totalorder %s2681_s15, %s3636_s5 }
 0x336   : > { %v1954_v30 = vrot.slane %v1953_v21, 1  ;;  %p2688_p2 = scmp.lt.s32.totalorder %s2686_s17, %s2682_s24 }
 0x337   : > { %s2051_s8 = scalar_lea.hbm %s3694_s1, %s2808_s27  ;;  %s2007_s27 = scalar_lea.sflag [#allocation14], %s381_s6 }
 0x338   : > { %s3572_s0 = sshll.u32 %s2051_s8, 4  ;;  %vm1955_vm10 = vcmp.lt.s32.totalorder %v1953_v21, %v1954_v30  ;;  %p2684_p13 = pnand %p2683_p10, %p2937_p9  ;;  %s2056_s0 = int_to_ptr.hbm [resolvable:$true] %s3572_s0 }
 0x339   : > { %v1956_v62 = vsel %vm1955_vm10, %v1953_v21, %v1954_v30  ;;  %p2689_p3 = por %p2688_p2, %p2687_p1 }
 0x33a   : > { %1969 = vst [vmem:[%s450_s20] sm:$0x1] %v1956_v62  ;;  %p2685_p0 = pneg %p2684_p13 }
 0x33c   : > { %p2690_p4 = pnand %p2689_p3, %p2685_p0 }
 0x33e   : > { %2693 = shalt.err (!%p2690_p4)
}
 0x33f   : > { %2358 = dma.vmem_to_hbm [thread:$0]  (%p2937_p9), %s2041_s10, 16, %s2043_s29, %s2007_s27  }
 0x340   : > { %s2708_s30 = sshra.s32 %s2056_s0, 4  ;;  %s2714_s18 = scalar_lea.hbm %s3694_s1, 2  ;;  %s2709_s30 = int_to_ptr.hbm [resolvable:$true] %s2708_s30 }
 0x341   : > { %s2710_s26 = scalar_lea.hbm %s2709_s30, 1  ;;  %p2715_p8 = scmp.lt.s32.totalorder %s2709_s30, %s3694_s1 }
 0x342   : > { %p2711_p5 = scmp.ne.s32.totalorder %s2709_s30, %s2710_s26  ;;  %p2716_p10 = scmp.lt.s32.totalorder %s2714_s18, %s2710_s26 }
 0x344   : > { %p2712_p6 = pnand %p2711_p5, %p2937_p9  ;;  %p2717_p13 = por %p2716_p10, %p2715_p8 }
 0x346   : > { %p2713_p7 = pneg %p2712_p6 }
 0x348   : > { %p2718_p0 = pnand %p2717_p13, %p2713_p7 }
 0x34a   : > { %2721 = shalt.err (!%p2718_p0)
}
 0x34b   : > { %2359 = dma.vmem_to_hbm [thread:$0]  (%p2937_p9), %s2054_s16, 16, %s2056_s0, %s2007_s27  }
 0x34c PF: > { %s3695_s9 = sld [smem:[#allocation24_spill]]  ;;  %p2379_p1 = pnand %p2331_p12, %p2946_p11 }
 0x34d   : > { %s3697_s23 = sld [smem:[#allocation27_spill]] }
 0x34e   : > { %p2380_p2 = pneg %p2379_p1 }
 0x352   : > { %s2080_s8 = sand.u32 1, %s3695_s9  }
 0x353   : > { %s2081_s10 = scalar_lea.sflag [#allocation6], %s2080_s8 }
 0x354   : > { %2783 = dma.done.wait (%p2380_p2), %s2081_s10, 16  }
 0x355   : > { %2785 = vsyncadd (%p2380_p2), %s2081_s10, 4294967280  ;;  %s3698_s29 = sadd.s32 4294967294, %s3697_s23  }
 0x356   : > { %s2089_s14 = sand.u32 1, %s3698_s29  }
 0x357   : > { %s2090_s15 = scalar_lea.sflag [#allocation14], %s2089_s14 }
 0x358   : > { %2787 = dma.done.wait (%p2380_p2), %s2090_s15, 32  }
 0x359   : > { %2789 = vsyncadd (%p2380_p2), %s2090_s15, 4294967264  ;;  %s2108_s24 = scalar_lea.sflag [#allocation17], %s2080_s8 }
 0x35a   : > { %2791 = dma.done.wait (%p2380_p2), %s2108_s24, 16  }
 0x35b   : > { %2793 = vsyncadd (%p2380_p2), %s2108_s24, 4294967280  ;;  %s36_s29 = sadd.s32 1, %s3697_s23   ;;  %s3699_s16 = sld [smem:[#allocation25_spill]] }
 0x35c   : > { %p33_p9 = scmp.ge.s32.totalorder %s36_s29, 4   ;;  %s3700_s26 = sld [smem:[#allocation29_spill]] }
 0x35d   : > { %s3701_s27 = sld [smem:[#allocation26_spill]]  ;;  %s3703_s24 = smov %s2800_s25 }
 0x35e   : > { %s3702_s28 = sld [smem:[#allocation28_spill]]  ;;  %35 = sbr.rel (!%p33_p9) target bundleno = 18 (0x12), region = 227 }
 0x361   : > { %s3704_s25 = smov %s3699_s16 }
 0x363   :  { %2113 = vsyncpa [#allocation5], 1 }
 0x364   :  { %2115 = vsyncpa [#allocation5 + $0x1], 1 }
 0x365   :  { %2116 = vsyncpa [#allocation8], 1 }
 0x366   :  { %2118 = vsyncpa [#allocation8 + $0x1], 1 }
 0x367   :  { %2119 = vsyncpa [#allocation11], 1 }
 0x368   :  { %2121 = vsyncpa [#allocation11 + $0x1], 1 }
 0x369   :  { %2122 = vsyncpa [#allocation6], 1 }
 0x36a   :  { %2124 = vsyncpa [#allocation6 + $0x1], 1 }
 0x36b   :  { %2125 = vsyncpa [#allocation14], 1 }
 0x36c   :  { %2127 = vsyncpa [#allocation14 + $0x1], 1 }
 0x36d   :  { %2128 = vsyncpa [#allocation17], 1 }
 0x36e   :  { %2130 = vsyncpa [#allocation17 + $0x1], 1 }

</bundles_post_ra>
